<compile_context>
chip_gen: v7x
topology: tpu7x:2x2x1
jax: 0.10.0
libtpu: 0.0.40
codegen_flags: <defaults>
</compile_context>

<pallas_src>
import math

import jax
import jax.numpy as jnp
from jax.experimental import pallas as pl
from jax.experimental.pallas import tpu as pltpu

SEQ_LEN = 8
INPUT_DIM = 32                  # latent size / rnn3 hidden size
HIDDEN = 2 * INPUT_DIM          # rnn4 hidden size (= 64)
N_FEATURES = 1                  # must be 1 for the torch repeat/reshape to be valid

H1 = INPUT_DIM                  # rnn3 hidden
H2 = HIDDEN                     # rnn4 hidden
PAD = 128                       # lane-block used to align the fused layer-2 LHS

GATE_I, GATE_F, GATE_G, GATE_O = 0, 1, 2, 3       # canonical PyTorch gate order
FUSED_ORDER = (GATE_I, GATE_F, GATE_O, GATE_G)    # kernel lane layout: (i, f, o | g)

# packed-parameter layouts
WPACK_ROWS = 2 * H1 + 2 * PAD   # [wih1 ; whh1 ; wih2 ; 0 ; whh2 ; 0]  (320 rows)
WPACK_COLS = 4 * H2             # 256 lanes
FPACK_ROWS = 4                  # [b1 ; b2 ; wout ; bout]
FPACK_COLS = 4 * H2


# ---------------------------------------------------------------------------
# Pallas kernel: both LSTM layers + output Linear, single fused unrolled loop.
# ---------------------------------------------------------------------------
def decoder_kernel(x_ref, wpack_ref, fpack_ref, out_ref):
    f32 = jnp.float32
    bf16 = jnp.bfloat16
    seq_len = out_ref.shape[0]

    # small f32 params, hoisted (a few vregs)
    b1 = fpack_ref[0:1, 0:4 * H1]          # (1, 128)  i/f/o columns pre-scaled by 0.5
    b2 = fpack_ref[1:2, 0:4 * H2]          # (1, 256)
    wout = fpack_ref[2:3, 0:H2]            # (1, 64)
    bout = fpack_ref[3:4, 0:1]             # (1, 1)

    # single tanh-slab LSTM gate update: sigmoid(z) = 0.5*tanh(z/2) + 0.5; the
    # 0.5 input scale is folded into the i/f/o weight columns at pack time, so
    # one EUP push covers all four gates, the affine fixup rides the VPU.
    def lstm_step(pre, c, H, first):
        y = jnp.tanh(pre)                              # one EUP push over 4H lanes
        sig = 0.5 * y[:, :3 * H] + 0.5                 # VPU fixup for (i, f, o)
        i_g = sig[:, 0:H]
        f_g = sig[:, H:2 * H]
        o_g = sig[:, 2 * H:3 * H]
        g_g = y[:, 3 * H:]
        c_new = i_g * g_g if first else f_g * c + i_g * g_g
        h_new = o_g * jnp.tanh(c_new)
        return h_new, c_new

    def emit(t, h2):
        # output_layer: Linear(H2 -> 1) as VPU multiply + lane reduction
        out_ref[t:t + 1, :] = jnp.sum(h2 * wout, axis=1, keepdims=True) + bout

    # decoder input is the SAME latent row at every timestep -> project once
    x_bf = x_ref[...].astype(bf16)
    xproj1 = jnp.dot(x_bf, wpack_ref[0:H1, 0:4 * H1],
                     preferred_element_type=f32) + b1            # (1, 128)

    pad1 = jnp.zeros((1, PAD - H1), f32)
    pad2 = jnp.zeros((1, PAD - H2), f32)

    # ---- t = 0 peeled: h = c = 0, so both recurrent dots and f*c vanish ----
    h1, c1 = lstm_step(xproj1, None, H1, first=True)
    pre2 = jnp.dot(h1.astype(bf16), wpack_ref[2 * H1:3 * H1, :],   # wih2 block only
                   preferred_element_type=f32) + b2
    h2, c2 = lstm_step(pre2, None, H2, first=True)
    emit(0, h2)

    # ---- t = 1 .. seq_len-1, fully unrolled (seq_len small & static) -------
    for t in range(1, seq_len):
        # layer 1 (rnn3) step t
        pre1 = xproj1 + jnp.dot(h1.astype(bf16),
                                wpack_ref[H1:2 * H1, 0:4 * H1],
                                preferred_element_type=f32)
        h1, c1 = lstm_step(pre1, c1, H1, first=False)

        # layer 2 (rnn4) step t: ONE fused dot over [h1 | 0 | h2 | 0] against
        # the pre-stacked [wih2 ; 0 ; whh2 ; 0] weight (lane-block aligned)
        lhs2 = jnp.concatenate([h1, pad1, h2, pad2], axis=1).astype(bf16)  # (1, 256)
        pre2 = jnp.dot(lhs2, wpack_ref[2 * H1:2 * H1 + 2 * PAD, :],
                       preferred_element_type=f32) + b2
        h2, c2 = lstm_step(pre2, c2, H2, first=False)
        emit(t, h2)


# ---------------------------------------------------------------------------
# Wrapper
# ---------------------------------------------------------------------------
def recurrent_decoder(x, wpack, fpack):
    """x: latent of shape (n_features, input_dim) (anything reshapable to it)."""
    x2d = x.reshape(N_FEATURES, INPUT_DIM).astype(jnp.float32)
    vmem = pl.BlockSpec(memory_space=pltpu.MemorySpace.VMEM)
    return pl.pallas_call(
        decoder_kernel,
        out_shape=jax.ShapeDtypeStruct((SEQ_LEN, N_FEATURES), jnp.float32),
        in_specs=[vmem, vmem, vmem],
        out_specs=vmem,
    )(x2d, wpack, fpack)


# ---------------------------------------------------------------------------
# Deterministic parameter init (mimics PyTorch U(-1/sqrt(H), 1/sqrt(H)))
# ---------------------------------------------------------------------------
def init_lstm(key, in_dim, hidden):
    """Per-gate params: wih (4,in,H), whh (4,H,H), b (4,1,H) (bih+bhh folded)."""
    k = 1.0 / math.sqrt(hidden)
    k1, k2, k3, k4 = jax.random.split(key, 4)
    wih = jax.random.uniform(k1, (4, in_dim, hidden), jnp.float32, -k, k)
    whh = jax.random.uniform(k2, (4, hidden, hidden), jnp.float32, -k, k)
    bih = jax.random.uniform(k3, (4, 1, hidden), jnp.float32, -k, k)
    bhh = jax.random.uniform(k4, (4, 1, hidden), jnp.float32, -k, k)
    return wih, whh, bih + bhh


def init_linear(key, in_dim, out_dim):
    k = 1.0 / math.sqrt(in_dim)
    k1, k2 = jax.random.split(key)
    w = jax.random.uniform(k1, (out_dim, in_dim), jnp.float32, -k, k)  # torch layout
    b = jax.random.uniform(k2, (1, out_dim), jnp.float32, -k, k)
    return w, b


def _fuse_and_fold(wih, whh, b, hidden):
    """Fuse gates along lanes in (i,f,o,g) order and fold the sigmoid->tanh
    0.5 input scale into the i/f/o columns (weights and bias)."""
    wih_f = jnp.concatenate([wih[g] for g in FUSED_ORDER], axis=1)   # (in, 4H)
    whh_f = jnp.concatenate([whh[g] for g in FUSED_ORDER], axis=1)   # (H, 4H)
    b_f = jnp.concatenate([b[g] for g in FUSED_ORDER], axis=1)       # (1, 4H)
    scale = jnp.concatenate([jnp.full((3 * hidden,), 0.5, jnp.float32),
                             jnp.ones((hidden,), jnp.float32)])
    return wih_f * scale, whh_f * scale, b_f * scale


def pack_params(lstm1, lstm2, wout, bout):
    """Pack all parameters into one bf16 weight buffer + one f32 misc buffer."""
    wih1, whh1, b1 = _fuse_and_fold(*lstm1, H1)
    wih2, whh2, b2 = _fuse_and_fold(*lstm2, H2)

    wpack = jnp.zeros((WPACK_ROWS, WPACK_COLS), jnp.float32)
    wpack = wpack.at[0:H1, 0:4 * H1].set(wih1)                       # rows   0: 32
    wpack = wpack.at[H1:2 * H1, 0:4 * H1].set(whh1)                  # rows  32: 64
    wpack = wpack.at[2 * H1:3 * H1, :].set(wih2)                     # rows  64: 96
    wpack = wpack.at[2 * H1 + PAD:2 * H1 + PAD + H2, :].set(whh2)    # rows 192:256
    wpack = wpack.astype(jnp.bfloat16)      # bf16 MXU operands, f32 accumulation

    fpack = jnp.zeros((FPACK_ROWS, FPACK_COLS), jnp.float32)
    fpack = fpack.at[0, 0:4 * H1].set(b1[0])
    fpack = fpack.at[1, 0:4 * H2].set(b2[0])
    fpack = fpack.at[2, 0:H2].set(wout[0])
    fpack = fpack.at[3, 0].set(bout[0, 0])
    return wpack, fpack


# ---------------------------------------------------------------------------
# Pure-JAX f32 reference (for correctness check)
# ---------------------------------------------------------------------------
def _lstm_ref(x, wih, whh, b):
    H = whh.shape[-1]
    h = jnp.zeros((1, H), jnp.float32)
    c = jnp.zeros((1, H), jnp.float32)
    hs = []
    for t in range(x.shape[0]):
        xt = x[t:t + 1]
        pre = [xt @ wih[g] + h @ whh[g] + b[g] for g in range(4)]
        i = jax.nn.sigmoid(pre[GATE_I])
        f = jax.nn.sigmoid(pre[GATE_F])
        g = jnp.tanh(pre[GATE_G])
        o = jax.nn.sigmoid(pre[GATE_O])
        c = f * c + i * g
        h = o * jnp.tanh(c)
        hs.append(h)
    return jnp.concatenate(hs, 0)


def ref_forward(x, raw_params):
    (wih1, whh1, b1), (wih2, whh2, b2), (wout, bout) = raw_params
    x_seq = jnp.broadcast_to(x.reshape(N_FEATURES, INPUT_DIM),
                             (SEQ_LEN, INPUT_DIM))        # torch repeat (n_features=1)
    h1 = _lstm_ref(x_seq, wih1, whh1, b1)                 # rnn3
    h2 = _lstm_ref(h1, wih2, whh2, b2)                    # rnn4
    return h2 @ wout.T + bout                             # output_layer


if __name__ == "__main__":
    import numpy as np

    key = jax.random.PRNGKey(0)
    kx, k1, k2, k3 = jax.random.split(key, 4)

    # latent produced by the matching encoder: (n_features, input_dim)
    x = jax.random.normal(kx, (N_FEATURES, INPUT_DIM), jnp.float32)

    lstm1 = init_lstm(k1, INPUT_DIM, INPUT_DIM)        # rnn3: 32 -> 32
    lstm2 = init_lstm(k2, INPUT_DIM, HIDDEN)           # rnn4: 32 -> 64
    wout, bout = init_linear(k3, HIDDEN, N_FEATURES)   # output_layer: 64 -> 1

    wpack, fpack = pack_params(lstm1, lstm2, wout, bout)

    out = recurrent_decoder(x, wpack, fpack)
    out = jax.block_until_ready(out)
    assert out.shape == (SEQ_LEN, N_FEATURES)

    ref = ref_forward(x, (lstm1, lstm2, (wout, bout)))
    # tolerance loosened vs the pure-f32 version: MXU operands are bf16 now
    np.testing.assert_allclose(np.asarray(out), np.asarray(ref),
                               rtol=5e-2, atol=3e-2)
    print("KERNEL_OK")
</pallas_src>

<mosaic_0001>
module attributes {stable_mosaic.version = 11 : i64} {
  func.func @decoder_kernel(%arg0: memref<1x32xf32, #tpu.memory_space<vmem>>, %arg1: memref<320x256xbf16, #tpu.memory_space<vmem>>, %arg2: memref<4x256xf32, #tpu.memory_space<vmem>>, %arg3: memref<8x1xf32, #tpu.memory_space<vmem>>) attributes {dimension_semantics = [], scalar_prefetch = 0 : i64, scratch_operands = 0 : i64, tpu.core_type = #tpu.core_type<tc>} {
    %c0 = arith.constant 0 : index
    %c0_0 = arith.constant 0 : index
    %0 = vector.load %arg2[%c0, %c0_0] : memref<4x256xf32, #tpu.memory_space<vmem>>, vector<1x128xf32>
    %c1 = arith.constant 1 : index
    %c0_1 = arith.constant 0 : index
    %1 = vector.load %arg2[%c1, %c0_1] : memref<4x256xf32, #tpu.memory_space<vmem>>, vector<1x256xf32>
    %c2 = arith.constant 2 : index
    %c0_2 = arith.constant 0 : index
    %2 = vector.load %arg2[%c2, %c0_2] : memref<4x256xf32, #tpu.memory_space<vmem>>, vector<1x64xf32>
    %c3 = arith.constant 3 : index
    %c0_3 = arith.constant 0 : index
    %3 = vector.load %arg2[%c3, %c0_3] : memref<4x256xf32, #tpu.memory_space<vmem>>, vector<1x1xf32>
    %c0_4 = arith.constant 0 : index
    %c0_5 = arith.constant 0 : index
    %4 = vector.load %arg0[%c0_4, %c0_5] : memref<1x32xf32, #tpu.memory_space<vmem>>, vector<1x32xf32>
    %5 = arith.truncf %4 : vector<1x32xf32> to vector<1x32xbf16>
    %c0_6 = arith.constant 0 : index
    %c0_7 = arith.constant 0 : index
    %6 = vector.load %arg1[%c0_6, %c0_7] : memref<320x256xbf16, #tpu.memory_space<vmem>>, vector<32x128xbf16>
    %cst = arith.constant dense<0.000000e+00> : vector<1x128xf32>
    %7 = tpu.matmul %5, %6, %cst {dimension_numbers = #tpu.dot_dimension_numbers<[1], [0], [0], [1], [0, 0, 1, 1], [], []>} : vector<1x32xbf16>, vector<32x128xbf16>, vector<1x128xf32> -> vector<1x128xf32>
    %8 = arith.addf %7, %0 : vector<1x128xf32>
    %cst_8 = arith.constant 0.000000e+00 : f32
    %9 = vector.broadcast %cst_8 : f32 to vector<1x96xf32>
    %cst_9 = arith.constant 0.000000e+00 : f32
    %10 = vector.broadcast %cst_9 : f32 to vector<1x64xf32>
    %11 = math.tanh %8 : vector<1x128xf32>
    %12 = vector.extract_strided_slice %11 {offsets = [0, 0], sizes = [1, 96], strides = [1, 1]} : vector<1x128xf32> to vector<1x96xf32>
    %cst_10 = arith.constant 5.000000e-01 : f32
    %13 = vector.broadcast %cst_10 : f32 to vector<1x96xf32>
    %14 = arith.mulf %13, %12 : vector<1x96xf32>
    %cst_11 = arith.constant 5.000000e-01 : f32
    %15 = vector.broadcast %cst_11 : f32 to vector<1x96xf32>
    %16 = arith.addf %14, %15 : vector<1x96xf32>
    %17 = vector.extract_strided_slice %16 {offsets = [0, 0], sizes = [1, 32], strides = [1, 1]} : vector<1x96xf32> to vector<1x32xf32>
    %18 = vector.extract_strided_slice %16 {offsets = [0, 64], sizes = [1, 32], strides = [1, 1]} : vector<1x96xf32> to vector<1x32xf32>
    %19 = vector.extract_strided_slice %11 {offsets = [0, 96], sizes = [1, 32], strides = [1, 1]} : vector<1x128xf32> to vector<1x32xf32>
    %20 = arith.mulf %17, %19 : vector<1x32xf32>
    %21 = math.tanh %20 : vector<1x32xf32>
    %22 = arith.mulf %18, %21 : vector<1x32xf32>
    %23 = arith.truncf %22 : vector<1x32xf32> to vector<1x32xbf16>
    %c64 = arith.constant 64 : index
    %c0_12 = arith.constant 0 : index
    %24 = vector.load %arg1[%c64, %c0_12] : memref<320x256xbf16, #tpu.memory_space<vmem>>, vector<32x256xbf16>
    %cst_13 = arith.constant dense<0.000000e+00> : vector<1x256xf32>
    %25 = tpu.matmul %23, %24, %cst_13 {dimension_numbers = #tpu.dot_dimension_numbers<[1], [0], [0], [1], [0, 0, 1, 1], [], []>} : vector<1x32xbf16>, vector<32x256xbf16>, vector<1x256xf32> -> vector<1x256xf32>
    %26 = arith.addf %25, %1 : vector<1x256xf32>
    %27 = math.tanh %26 : vector<1x256xf32>
    %28 = vector.extract_strided_slice %27 {offsets = [0, 0], sizes = [1, 192], strides = [1, 1]} : vector<1x256xf32> to vector<1x192xf32>
    %cst_14 = arith.constant 5.000000e-01 : f32
    %29 = vector.broadcast %cst_14 : f32 to vector<1x192xf32>
    %30 = arith.mulf %29, %28 : vector<1x192xf32>
    %cst_15 = arith.constant 5.000000e-01 : f32
    %31 = vector.broadcast %cst_15 : f32 to vector<1x192xf32>
    %32 = arith.addf %30, %31 : vector<1x192xf32>
    %33 = vector.extract_strided_slice %32 {offsets = [0, 0], sizes = [1, 64], strides = [1, 1]} : vector<1x192xf32> to vector<1x64xf32>
    %34 = vector.extract_strided_slice %32 {offsets = [0, 128], sizes = [1, 64], strides = [1, 1]} : vector<1x192xf32> to vector<1x64xf32>
    %35 = vector.extract_strided_slice %27 {offsets = [0, 192], sizes = [1, 64], strides = [1, 1]} : vector<1x256xf32> to vector<1x64xf32>
    %36 = arith.mulf %33, %35 : vector<1x64xf32>
    %37 = math.tanh %36 : vector<1x64xf32>
    %38 = arith.mulf %34, %37 : vector<1x64xf32>
    %39 = arith.mulf %38, %2 : vector<1x64xf32>
    %cst_16 = arith.constant dense<0.000000e+00> : vector<1xf32>
    %40 = vector.multi_reduction <add>, %39, %cst_16 [1] : vector<1x64xf32> to vector<1xf32>
    %41 = vector.shape_cast %40 : vector<1xf32> to vector<1x1xf32>
    %42 = arith.addf %41, %3 : vector<1x1xf32>
    %c0_17 = arith.constant 0 : index
    %c0_18 = arith.constant 0 : index
    %43 = vector.load %arg3[%c0_17, %c0_18] : memref<8x1xf32, #tpu.memory_space<vmem>>, vector<1x1xf32>
    tpu.vector_store %arg3[%c0_17, %c0_18], %42 {strides = array<i32>} : memref<8x1xf32, #tpu.memory_space<vmem>>, vector<1x1xf32>,
    %44 = arith.truncf %22 : vector<1x32xf32> to vector<1x32xbf16>
    %c32 = arith.constant 32 : index
    %c0_19 = arith.constant 0 : index
    %45 = vector.load %arg1[%c32, %c0_19] : memref<320x256xbf16, #tpu.memory_space<vmem>>, vector<32x128xbf16>
    %cst_20 = arith.constant dense<0.000000e+00> : vector<1x128xf32>
    %46 = tpu.matmul %44, %45, %cst_20 {dimension_numbers = #tpu.dot_dimension_numbers<[1], [0], [0], [1], [0, 0, 1, 1], [], []>} : vector<1x32xbf16>, vector<32x128xbf16>, vector<1x128xf32> -> vector<1x128xf32>
    %47 = arith.addf %8, %46 : vector<1x128xf32>
    %48 = math.tanh %47 : vector<1x128xf32>
    %49 = vector.extract_strided_slice %48 {offsets = [0, 0], sizes = [1, 96], strides = [1, 1]} : vector<1x128xf32> to vector<1x96xf32>
    %cst_21 = arith.constant 5.000000e-01 : f32
    %50 = vector.broadcast %cst_21 : f32 to vector<1x96xf32>
    %51 = arith.mulf %50, %49 : vector<1x96xf32>
    %cst_22 = arith.constant 5.000000e-01 : f32
    %52 = vector.broadcast %cst_22 : f32 to vector<1x96xf32>
    %53 = arith.addf %51, %52 : vector<1x96xf32>
    %54 = vector.extract_strided_slice %53 {offsets = [0, 0], sizes = [1, 32], strides = [1, 1]} : vector<1x96xf32> to vector<1x32xf32>
    %55 = vector.extract_strided_slice %53 {offsets = [0, 32], sizes = [1, 32], strides = [1, 1]} : vector<1x96xf32> to vector<1x32xf32>
    %56 = vector.extract_strided_slice %53 {offsets = [0, 64], sizes = [1, 32], strides = [1, 1]} : vector<1x96xf32> to vector<1x32xf32>
    %57 = vector.extract_strided_slice %48 {offsets = [0, 96], sizes = [1, 32], strides = [1, 1]} : vector<1x128xf32> to vector<1x32xf32>
    %58 = arith.mulf %55, %20 : vector<1x32xf32>
    %59 = arith.mulf %54, %57 : vector<1x32xf32>
    %60 = arith.addf %58, %59 : vector<1x32xf32>
    %61 = math.tanh %60 : vector<1x32xf32>
    %62 = arith.mulf %56, %61 : vector<1x32xf32>
    %63 = tpu.concatenate %62, %9, %38, %10 in 1 : vector<1x32xf32>, vector<1x96xf32>, vector<1x64xf32>, vector<1x64xf32> -> vector<1x256xf32>
    %64 = arith.truncf %63 : vector<1x256xf32> to vector<1x256xbf16>
    %c64_23 = arith.constant 64 : index
    %c0_24 = arith.constant 0 : index
    %65 = vector.load %arg1[%c64_23, %c0_24] : memref<320x256xbf16, #tpu.memory_space<vmem>>, vector<256x256xbf16>
    %cst_25 = arith.constant dense<0.000000e+00> : vector<1x256xf32>
    %66 = tpu.matmul %64, %65, %cst_25 {dimension_numbers = #tpu.dot_dimension_numbers<[1], [0], [0], [1], [0, 0, 1, 1], [], []>} : vector<1x256xbf16>, vector<256x256xbf16>, vector<1x256xf32> -> vector<1x256xf32>
    %67 = arith.addf %66, %1 : vector<1x256xf32>
    %68 = math.tanh %67 : vector<1x256xf32>
    %69 = vector.extract_strided_slice %68 {offsets = [0, 0], sizes = [1, 192], strides = [1, 1]} : vector<1x256xf32> to vector<1x192xf32>
    %cst_26 = arith.constant 5.000000e-01 : f32
    %70 = vector.broadcast %cst_26 : f32 to vector<1x192xf32>
    %71 = arith.mulf %70, %69 : vector<1x192xf32>
    %cst_27 = arith.constant 5.000000e-01 : f32
    %72 = vector.broadcast %cst_27 : f32 to vector<1x192xf32>
    %73 = arith.addf %71, %72 : vector<1x192xf32>
    %74 = vector.extract_strided_slice %73 {offsets = [0, 0], sizes = [1, 64], strides = [1, 1]} : vector<1x192xf32> to vector<1x64xf32>
    %75 = vector.extract_strided_slice %73 {offsets = [0, 64], sizes = [1, 64], strides = [1, 1]} : vector<1x192xf32> to vector<1x64xf32>
    %76 = vector.extract_strided_slice %73 {offsets = [0, 128], sizes = [1, 64], strides = [1, 1]} : vector<1x192xf32> to vector<1x64xf32>
    %77 = vector.extract_strided_slice %68 {offsets = [0, 192], sizes = [1, 64], strides = [1, 1]} : vector<1x256xf32> to vector<1x64xf32>
    %78 = arith.mulf %75, %36 : vector<1x64xf32>
    %79 = arith.mulf %74, %77 : vector<1x64xf32>
    %80 = arith.addf %78, %79 : vector<1x64xf32>
    %81 = math.tanh %80 : vector<1x64xf32>
    %82 = arith.mulf %76, %81 : vector<1x64xf32>
    %83 = arith.mulf %82, %2 : vector<1x64xf32>
    %cst_28 = arith.constant dense<0.000000e+00> : vector<1xf32>
    %84 = vector.multi_reduction <add>, %83, %cst_28 [1] : vector<1x64xf32> to vector<1xf32>
    %85 = vector.shape_cast %84 : vector<1xf32> to vector<1x1xf32>
    %86 = arith.addf %85, %3 : vector<1x1xf32>
    %c1_29 = arith.constant 1 : index
    %c0_30 = arith.constant 0 : index
    %87 = vector.load %arg3[%c1_29, %c0_30] : memref<8x1xf32, #tpu.memory_space<vmem>>, vector<1x1xf32>
    tpu.vector_store %arg3[%c1_29, %c0_30], %86 {strides = array<i32>} : memref<8x1xf32, #tpu.memory_space<vmem>>, vector<1x1xf32>,
    %88 = arith.truncf %62 : vector<1x32xf32> to vector<1x32xbf16>
    %c32_31 = arith.constant 32 : index
    %c0_32 = arith.constant 0 : index
    %89 = vector.load %arg1[%c32_31, %c0_32] : memref<320x256xbf16, #tpu.memory_space<vmem>>, vector<32x128xbf16>
    %cst_33 = arith.constant dense<0.000000e+00> : vector<1x128xf32>
    %90 = tpu.matmul %88, %89, %cst_33 {dimension_numbers = #tpu.dot_dimension_numbers<[1], [0], [0], [1], [0, 0, 1, 1], [], []>} : vector<1x32xbf16>, vector<32x128xbf16>, vector<1x128xf32> -> vector<1x128xf32>
    %91 = arith.addf %8, %90 : vector<1x128xf32>
    %92 = math.tanh %91 : vector<1x128xf32>
    %93 = vector.extract_strided_slice %92 {offsets = [0, 0], sizes = [1, 96], strides = [1, 1]} : vector<1x128xf32> to vector<1x96xf32>
    %cst_34 = arith.constant 5.000000e-01 : f32
    %94 = vector.broadcast %cst_34 : f32 to vector<1x96xf32>
    %95 = arith.mulf %94, %93 : vector<1x96xf32>
    %cst_35 = arith.constant 5.000000e-01 : f32
    %96 = vector.broadcast %cst_35 : f32 to vector<1x96xf32>
    %97 = arith.addf %95, %96 : vector<1x96xf32>
    %98 = vector.extract_strided_slice %97 {offsets = [0, 0], sizes = [1, 32], strides = [1, 1]} : vector<1x96xf32> to vector<1x32xf32>
    %99 = vector.extract_strided_slice %97 {offsets = [0, 32], sizes = [1, 32], strides = [1, 1]} : vector<1x96xf32> to vector<1x32xf32>
    %100 = vector.extract_strided_slice %97 {offsets = [0, 64], sizes = [1, 32], strides = [1, 1]} : vector<1x96xf32> to vector<1x32xf32>
    %101 = vector.extract_strided_slice %92 {offsets = [0, 96], sizes = [1, 32], strides = [1, 1]} : vector<1x128xf32> to vector<1x32xf32>
    %102 = arith.mulf %99, %60 : vector<1x32xf32>
    %103 = arith.mulf %98, %101 : vector<1x32xf32>
    %104 = arith.addf %102, %103 : vector<1x32xf32>
    %105 = math.tanh %104 : vector<1x32xf32>
    %106 = arith.mulf %100, %105 : vector<1x32xf32>
    %107 = tpu.concatenate %106, %9, %82, %10 in 1 : vector<1x32xf32>, vector<1x96xf32>, vector<1x64xf32>, vector<1x64xf32> -> vector<1x256xf32>
    %108 = arith.truncf %107 : vector<1x256xf32> to vector<1x256xbf16>
    %c64_36 = arith.constant 64 : index
    %c0_37 = arith.constant 0 : index
    %109 = vector.load %arg1[%c64_36, %c0_37] : memref<320x256xbf16, #tpu.memory_space<vmem>>, vector<256x256xbf16>
    %cst_38 = arith.constant dense<0.000000e+00> : vector<1x256xf32>
    %110 = tpu.matmul %108, %109, %cst_38 {dimension_numbers = #tpu.dot_dimension_numbers<[1], [0], [0], [1], [0, 0, 1, 1], [], []>} : vector<1x256xbf16>, vector<256x256xbf16>, vector<1x256xf32> -> vector<1x256xf32>
    %111 = arith.addf %110, %1 : vector<1x256xf32>
    %112 = math.tanh %111 : vector<1x256xf32>
    %113 = vector.extract_strided_slice %112 {offsets = [0, 0], sizes = [1, 192], strides = [1, 1]} : vector<1x256xf32> to vector<1x192xf32>
    %cst_39 = arith.constant 5.000000e-01 : f32
    %114 = vector.broadcast %cst_39 : f32 to vector<1x192xf32>
    %115 = arith.mulf %114, %113 : vector<1x192xf32>
    %cst_40 = arith.constant 5.000000e-01 : f32
    %116 = vector.broadcast %cst_40 : f32 to vector<1x192xf32>
    %117 = arith.addf %115, %116 : vector<1x192xf32>
    %118 = vector.extract_strided_slice %117 {offsets = [0, 0], sizes = [1, 64], strides = [1, 1]} : vector<1x192xf32> to vector<1x64xf32>
    %119 = vector.extract_strided_slice %117 {offsets = [0, 64], sizes = [1, 64], strides = [1, 1]} : vector<1x192xf32> to vector<1x64xf32>
    %120 = vector.extract_strided_slice %117 {offsets = [0, 128], sizes = [1, 64], strides = [1, 1]} : vector<1x192xf32> to vector<1x64xf32>
    %121 = vector.extract_strided_slice %112 {offsets = [0, 192], sizes = [1, 64], strides = [1, 1]} : vector<1x256xf32> to vector<1x64xf32>
    %122 = arith.mulf %119, %80 : vector<1x64xf32>
    %123 = arith.mulf %118, %121 : vector<1x64xf32>
    %124 = arith.addf %122, %123 : vector<1x64xf32>
    %125 = math.tanh %124 : vector<1x64xf32>
    %126 = arith.mulf %120, %125 : vector<1x64xf32>
    %127 = arith.mulf %126, %2 : vector<1x64xf32>
    %cst_41 = arith.constant dense<0.000000e+00> : vector<1xf32>
    %128 = vector.multi_reduction <add>, %127, %cst_41 [1] : vector<1x64xf32> to vector<1xf32>
    %129 = vector.shape_cast %128 : vector<1xf32> to vector<1x1xf32>
    %130 = arith.addf %129, %3 : vector<1x1xf32>
    %c2_42 = arith.constant 2 : index
    %c0_43 = arith.constant 0 : index
    %131 = vector.load %arg3[%c2_42, %c0_43] : memref<8x1xf32, #tpu.memory_space<vmem>>, vector<1x1xf32>
    tpu.vector_store %arg3[%c2_42, %c0_43], %130 {strides = array<i32>} : memref<8x1xf32, #tpu.memory_space<vmem>>, vector<1x1xf32>,
    %132 = arith.truncf %106 : vector<1x32xf32> to vector<1x32xbf16>
    %c32_44 = arith.constant 32 : index
    %c0_45 = arith.constant 0 : index
    %133 = vector.load %arg1[%c32_44, %c0_45] : memref<320x256xbf16, #tpu.memory_space<vmem>>, vector<32x128xbf16>
    %cst_46 = arith.constant dense<0.000000e+00> : vector<1x128xf32>
    %134 = tpu.matmul %132, %133, %cst_46 {dimension_numbers = #tpu.dot_dimension_numbers<[1], [0], [0], [1], [0, 0, 1, 1], [], []>} : vector<1x32xbf16>, vector<32x128xbf16>, vector<1x128xf32> -> vector<1x128xf32>
    %135 = arith.addf %8, %134 : vector<1x128xf32>
    %136 = math.tanh %135 : vector<1x128xf32>
    %137 = vector.extract_strided_slice %136 {offsets = [0, 0], sizes = [1, 96], strides = [1, 1]} : vector<1x128xf32> to vector<1x96xf32>
    %cst_47 = arith.constant 5.000000e-01 : f32
    %138 = vector.broadcast %cst_47 : f32 to vector<1x96xf32>
    %139 = arith.mulf %138, %137 : vector<1x96xf32>
    %cst_48 = arith.constant 5.000000e-01 : f32
    %140 = vector.broadcast %cst_48 : f32 to vector<1x96xf32>
    %141 = arith.addf %139, %140 : vector<1x96xf32>
    %142 = vector.extract_strided_slice %141 {offsets = [0, 0], sizes = [1, 32], strides = [1, 1]} : vector<1x96xf32> to vector<1x32xf32>
    %143 = vector.extract_strided_slice %141 {offsets = [0, 32], sizes = [1, 32], strides = [1, 1]} : vector<1x96xf32> to vector<1x32xf32>
    %144 = vector.extract_strided_slice %141 {offsets = [0, 64], sizes = [1, 32], strides = [1, 1]} : vector<1x96xf32> to vector<1x32xf32>
    %145 = vector.extract_strided_slice %136 {offsets = [0, 96], sizes = [1, 32], strides = [1, 1]} : vector<1x128xf32> to vector<1x32xf32>
    %146 = arith.mulf %143, %104 : vector<1x32xf32>
    %147 = arith.mulf %142, %145 : vector<1x32xf32>
    %148 = arith.addf %146, %147 : vector<1x32xf32>
    %149 = math.tanh %148 : vector<1x32xf32>
    %150 = arith.mulf %144, %149 : vector<1x32xf32>
    %151 = tpu.concatenate %150, %9, %126, %10 in 1 : vector<1x32xf32>, vector<1x96xf32>, vector<1x64xf32>, vector<1x64xf32> -> vector<1x256xf32>
    %152 = arith.truncf %151 : vector<1x256xf32> to vector<1x256xbf16>
    %c64_49 = arith.constant 64 : index
    %c0_50 = arith.constant 0 : index
    %153 = vector.load %arg1[%c64_49, %c0_50] : memref<320x256xbf16, #tpu.memory_space<vmem>>, vector<256x256xbf16>
    %cst_51 = arith.constant dense<0.000000e+00> : vector<1x256xf32>
    %154 = tpu.matmul %152, %153, %cst_51 {dimension_numbers = #tpu.dot_dimension_numbers<[1], [0], [0], [1], [0, 0, 1, 1], [], []>} : vector<1x256xbf16>, vector<256x256xbf16>, vector<1x256xf32> -> vector<1x256xf32>
    %155 = arith.addf %154, %1 : vector<1x256xf32>
    %156 = math.tanh %155 : vector<1x256xf32>
    %157 = vector.extract_strided_slice %156 {offsets = [0, 0], sizes = [1, 192], strides = [1, 1]} : vector<1x256xf32> to vector<1x192xf32>
    %cst_52 = arith.constant 5.000000e-01 : f32
    %158 = vector.broadcast %cst_52 : f32 to vector<1x192xf32>
    %159 = arith.mulf %158, %157 : vector<1x192xf32>
    %cst_53 = arith.constant 5.000000e-01 : f32
    %160 = vector.broadcast %cst_53 : f32 to vector<1x192xf32>
    %161 = arith.addf %159, %160 : vector<1x192xf32>
    %162 = vector.extract_strided_slice %161 {offsets = [0, 0], sizes = [1, 64], strides = [1, 1]} : vector<1x192xf32> to vector<1x64xf32>
    %163 = vector.extract_strided_slice %161 {offsets = [0, 64], sizes = [1, 64], strides = [1, 1]} : vector<1x192xf32> to vector<1x64xf32>
    %164 = vector.extract_strided_slice %161 {offsets = [0, 128], sizes = [1, 64], strides = [1, 1]} : vector<1x192xf32> to vector<1x64xf32>
    %165 = vector.extract_strided_slice %156 {offsets = [0, 192], sizes = [1, 64], strides = [1, 1]} : vector<1x256xf32> to vector<1x64xf32>
    %166 = arith.mulf %163, %124 : vector<1x64xf32>
    %167 = arith.mulf %162, %165 : vector<1x64xf32>
    %168 = arith.addf %166, %167 : vector<1x64xf32>
    %169 = math.tanh %168 : vector<1x64xf32>
    %170 = arith.mulf %164, %169 : vector<1x64xf32>
    %171 = arith.mulf %170, %2 : vector<1x64xf32>
    %cst_54 = arith.constant dense<0.000000e+00> : vector<1xf32>
    %172 = vector.multi_reduction <add>, %171, %cst_54 [1] : vector<1x64xf32> to vector<1xf32>
    %173 = vector.shape_cast %172 : vector<1xf32> to vector<1x1xf32>
    %174 = arith.addf %173, %3 : vector<1x1xf32>
    %c3_55 = arith.constant 3 : index
    %c0_56 = arith.constant 0 : index
    %175 = vector.load %arg3[%c3_55, %c0_56] : memref<8x1xf32, #tpu.memory_space<vmem>>, vector<1x1xf32>
    tpu.vector_store %arg3[%c3_55, %c0_56], %174 {strides = array<i32>} : memref<8x1xf32, #tpu.memory_space<vmem>>, vector<1x1xf32>,
    %176 = arith.truncf %150 : vector<1x32xf32> to vector<1x32xbf16>
    %c32_57 = arith.constant 32 : index
    %c0_58 = arith.constant 0 : index
    %177 = vector.load %arg1[%c32_57, %c0_58] : memref<320x256xbf16, #tpu.memory_space<vmem>>, vector<32x128xbf16>
    %cst_59 = arith.constant dense<0.000000e+00> : vector<1x128xf32>
    %178 = tpu.matmul %176, %177, %cst_59 {dimension_numbers = #tpu.dot_dimension_numbers<[1], [0], [0], [1], [0, 0, 1, 1], [], []>} : vector<1x32xbf16>, vector<32x128xbf16>, vector<1x128xf32> -> vector<1x128xf32>
    %179 = arith.addf %8, %178 : vector<1x128xf32>
    %180 = math.tanh %179 : vector<1x128xf32>
    %181 = vector.extract_strided_slice %180 {offsets = [0, 0], sizes = [1, 96], strides = [1, 1]} : vector<1x128xf32> to vector<1x96xf32>
    %cst_60 = arith.constant 5.000000e-01 : f32
    %182 = vector.broadcast %cst_60 : f32 to vector<1x96xf32>
    %183 = arith.mulf %182, %181 : vector<1x96xf32>
    %cst_61 = arith.constant 5.000000e-01 : f32
    %184 = vector.broadcast %cst_61 : f32 to vector<1x96xf32>
    %185 = arith.addf %183, %184 : vector<1x96xf32>
    %186 = vector.extract_strided_slice %185 {offsets = [0, 0], sizes = [1, 32], strides = [1, 1]} : vector<1x96xf32> to vector<1x32xf32>
    %187 = vector.extract_strided_slice %185 {offsets = [0, 32], sizes = [1, 32], strides = [1, 1]} : vector<1x96xf32> to vector<1x32xf32>
    %188 = vector.extract_strided_slice %185 {offsets = [0, 64], sizes = [1, 32], strides = [1, 1]} : vector<1x96xf32> to vector<1x32xf32>
    %189 = vector.extract_strided_slice %180 {offsets = [0, 96], sizes = [1, 32], strides = [1, 1]} : vector<1x128xf32> to vector<1x32xf32>
    %190 = arith.mulf %187, %148 : vector<1x32xf32>
    %191 = arith.mulf %186, %189 : vector<1x32xf32>
    %192 = arith.addf %190, %191 : vector<1x32xf32>
    %193 = math.tanh %192 : vector<1x32xf32>
    %194 = arith.mulf %188, %193 : vector<1x32xf32>
    %195 = tpu.concatenate %194, %9, %170, %10 in 1 : vector<1x32xf32>, vector<1x96xf32>, vector<1x64xf32>, vector<1x64xf32> -> vector<1x256xf32>
    %196 = arith.truncf %195 : vector<1x256xf32> to vector<1x256xbf16>
    %c64_62 = arith.constant 64 : index
    %c0_63 = arith.constant 0 : index
    %197 = vector.load %arg1[%c64_62, %c0_63] : memref<320x256xbf16, #tpu.memory_space<vmem>>, vector<256x256xbf16>
    %cst_64 = arith.constant dense<0.000000e+00> : vector<1x256xf32>
    %198 = tpu.matmul %196, %197, %cst_64 {dimension_numbers = #tpu.dot_dimension_numbers<[1], [0], [0], [1], [0, 0, 1, 1], [], []>} : vector<1x256xbf16>, vector<256x256xbf16>, vector<1x256xf32> -> vector<1x256xf32>
    %199 = arith.addf %198, %1 : vector<1x256xf32>
    %200 = math.tanh %199 : vector<1x256xf32>
    %201 = vector.extract_strided_slice %200 {offsets = [0, 0], sizes = [1, 192], strides = [1, 1]} : vector<1x256xf32> to vector<1x192xf32>
    %cst_65 = arith.constant 5.000000e-01 : f32
    %202 = vector.broadcast %cst_65 : f32 to vector<1x192xf32>
    %203 = arith.mulf %202, %201 : vector<1x192xf32>
    %cst_66 = arith.constant 5.000000e-01 : f32
    %204 = vector.broadcast %cst_66 : f32 to vector<1x192xf32>
    %205 = arith.addf %203, %204 : vector<1x192xf32>
    %206 = vector.extract_strided_slice %205 {offsets = [0, 0], sizes = [1, 64], strides = [1, 1]} : vector<1x192xf32> to vector<1x64xf32>
    %207 = vector.extract_strided_slice %205 {offsets = [0, 64], sizes = [1, 64], strides = [1, 1]} : vector<1x192xf32> to vector<1x64xf32>
    %208 = vector.extract_strided_slice %205 {offsets = [0, 128], sizes = [1, 64], strides = [1, 1]} : vector<1x192xf32> to vector<1x64xf32>
    %209 = vector.extract_strided_slice %200 {offsets = [0, 192], sizes = [1, 64], strides = [1, 1]} : vector<1x256xf32> to vector<1x64xf32>
    %210 = arith.mulf %207, %168 : vector<1x64xf32>
    %211 = arith.mulf %206, %209 : vector<1x64xf32>
    %212 = arith.addf %210, %211 : vector<1x64xf32>
    %213 = math.tanh %212 : vector<1x64xf32>
    %214 = arith.mulf %208, %213 : vector<1x64xf32>
    %215 = arith.mulf %214, %2 : vector<1x64xf32>
    %cst_67 = arith.constant dense<0.000000e+00> : vector<1xf32>
    %216 = vector.multi_reduction <add>, %215, %cst_67 [1] : vector<1x64xf32> to vector<1xf32>
    %217 = vector.shape_cast %216 : vector<1xf32> to vector<1x1xf32>
    %218 = arith.addf %217, %3 : vector<1x1xf32>
    %c4 = arith.constant 4 : index
    %c0_68 = arith.constant 0 : index
    %219 = vector.load %arg3[%c4, %c0_68] : memref<8x1xf32, #tpu.memory_space<vmem>>, vector<1x1xf32>
    tpu.vector_store %arg3[%c4, %c0_68], %218 {strides = array<i32>} : memref<8x1xf32, #tpu.memory_space<vmem>>, vector<1x1xf32>,
    %220 = arith.truncf %194 : vector<1x32xf32> to vector<1x32xbf16>
    %c32_69 = arith.constant 32 : index
    %c0_70 = arith.constant 0 : index
    %221 = vector.load %arg1[%c32_69, %c0_70] : memref<320x256xbf16, #tpu.memory_space<vmem>>, vector<32x128xbf16>
    %cst_71 = arith.constant dense<0.000000e+00> : vector<1x128xf32>
    %222 = tpu.matmul %220, %221, %cst_71 {dimension_numbers = #tpu.dot_dimension_numbers<[1], [0], [0], [1], [0, 0, 1, 1], [], []>} : vector<1x32xbf16>, vector<32x128xbf16>, vector<1x128xf32> -> vector<1x128xf32>
    %223 = arith.addf %8, %222 : vector<1x128xf32>
    %224 = math.tanh %223 : vector<1x128xf32>
    %225 = vector.extract_strided_slice %224 {offsets = [0, 0], sizes = [1, 96], strides = [1, 1]} : vector<1x128xf32> to vector<1x96xf32>
    %cst_72 = arith.constant 5.000000e-01 : f32
    %226 = vector.broadcast %cst_72 : f32 to vector<1x96xf32>
    %227 = arith.mulf %226, %225 : vector<1x96xf32>
    %cst_73 = arith.constant 5.000000e-01 : f32
    %228 = vector.broadcast %cst_73 : f32 to vector<1x96xf32>
    %229 = arith.addf %227, %228 : vector<1x96xf32>
    %230 = vector.extract_strided_slice %229 {offsets = [0, 0], sizes = [1, 32], strides = [1, 1]} : vector<1x96xf32> to vector<1x32xf32>
    %231 = vector.extract_strided_slice %229 {offsets = [0, 32], sizes = [1, 32], strides = [1, 1]} : vector<1x96xf32> to vector<1x32xf32>
    %232 = vector.extract_strided_slice %229 {offsets = [0, 64], sizes = [1, 32], strides = [1, 1]} : vector<1x96xf32> to vector<1x32xf32>
    %233 = vector.extract_strided_slice %224 {offsets = [0, 96], sizes = [1, 32], strides = [1, 1]} : vector<1x128xf32> to vector<1x32xf32>
    %234 = arith.mulf %231, %192 : vector<1x32xf32>
    %235 = arith.mulf %230, %233 : vector<1x32xf32>
    %236 = arith.addf %234, %235 : vector<1x32xf32>
    %237 = math.tanh %236 : vector<1x32xf32>
    %238 = arith.mulf %232, %237 : vector<1x32xf32>
    %239 = tpu.concatenate %238, %9, %214, %10 in 1 : vector<1x32xf32>, vector<1x96xf32>, vector<1x64xf32>, vector<1x64xf32> -> vector<1x256xf32>
    %240 = arith.truncf %239 : vector<1x256xf32> to vector<1x256xbf16>
    %c64_74 = arith.constant 64 : index
    %c0_75 = arith.constant 0 : index
    %241 = vector.load %arg1[%c64_74, %c0_75] : memref<320x256xbf16, #tpu.memory_space<vmem>>, vector<256x256xbf16>
    %cst_76 = arith.constant dense<0.000000e+00> : vector<1x256xf32>
    %242 = tpu.matmul %240, %241, %cst_76 {dimension_numbers = #tpu.dot_dimension_numbers<[1], [0], [0], [1], [0, 0, 1, 1], [], []>} : vector<1x256xbf16>, vector<256x256xbf16>, vector<1x256xf32> -> vector<1x256xf32>
    %243 = arith.addf %242, %1 : vector<1x256xf32>
    %244 = math.tanh %243 : vector<1x256xf32>
    %245 = vector.extract_strided_slice %244 {offsets = [0, 0], sizes = [1, 192], strides = [1, 1]} : vector<1x256xf32> to vector<1x192xf32>
    %cst_77 = arith.constant 5.000000e-01 : f32
    %246 = vector.broadcast %cst_77 : f32 to vector<1x192xf32>
    %247 = arith.mulf %246, %245 : vector<1x192xf32>
    %cst_78 = arith.constant 5.000000e-01 : f32
    %248 = vector.broadcast %cst_78 : f32 to vector<1x192xf32>
    %249 = arith.addf %247, %248 : vector<1x192xf32>
    %250 = vector.extract_strided_slice %249 {offsets = [0, 0], sizes = [1, 64], strides = [1, 1]} : vector<1x192xf32> to vector<1x64xf32>
    %251 = vector.extract_strided_slice %249 {offsets = [0, 64], sizes = [1, 64], strides = [1, 1]} : vector<1x192xf32> to vector<1x64xf32>
    %252 = vector.extract_strided_slice %249 {offsets = [0, 128], sizes = [1, 64], strides = [1, 1]} : vector<1x192xf32> to vector<1x64xf32>
    %253 = vector.extract_strided_slice %244 {offsets = [0, 192], sizes = [1, 64], strides = [1, 1]} : vector<1x256xf32> to vector<1x64xf32>
    %254 = arith.mulf %251, %212 : vector<1x64xf32>
    %255 = arith.mulf %250, %253 : vector<1x64xf32>
    %256 = arith.addf %254, %255 : vector<1x64xf32>
    %257 = math.tanh %256 : vector<1x64xf32>
    %258 = arith.mulf %252, %257 : vector<1x64xf32>
    %259 = arith.mulf %258, %2 : vector<1x64xf32>
    %cst_79 = arith.constant dense<0.000000e+00> : vector<1xf32>
    %260 = vector.multi_reduction <add>, %259, %cst_79 [1] : vector<1x64xf32> to vector<1xf32>
    %261 = vector.shape_cast %260 : vector<1xf32> to vector<1x1xf32>
    %262 = arith.addf %261, %3 : vector<1x1xf32>
    %c5 = arith.constant 5 : index
    %c0_80 = arith.constant 0 : index
    %263 = vector.load %arg3[%c5, %c0_80] : memref<8x1xf32, #tpu.memory_space<vmem>>, vector<1x1xf32>
    tpu.vector_store %arg3[%c5, %c0_80], %262 {strides = array<i32>} : memref<8x1xf32, #tpu.memory_space<vmem>>, vector<1x1xf32>,
    %264 = arith.truncf %238 : vector<1x32xf32> to vector<1x32xbf16>
    %c32_81 = arith.constant 32 : index
    %c0_82 = arith.constant 0 : index
    %265 = vector.load %arg1[%c32_81, %c0_82] : memref<320x256xbf16, #tpu.memory_space<vmem>>, vector<32x128xbf16>
    %cst_83 = arith.constant dense<0.000000e+00> : vector<1x128xf32>
    %266 = tpu.matmul %264, %265, %cst_83 {dimension_numbers = #tpu.dot_dimension_numbers<[1], [0], [0], [1], [0, 0, 1, 1], [], []>} : vector<1x32xbf16>, vector<32x128xbf16>, vector<1x128xf32> -> vector<1x128xf32>
    %267 = arith.addf %8, %266 : vector<1x128xf32>
    %268 = math.tanh %267 : vector<1x128xf32>
    %269 = vector.extract_strided_slice %268 {offsets = [0, 0], sizes = [1, 96], strides = [1, 1]} : vector<1x128xf32> to vector<1x96xf32>
    %cst_84 = arith.constant 5.000000e-01 : f32
    %270 = vector.broadcast %cst_84 : f32 to vector<1x96xf32>
    %271 = arith.mulf %270, %269 : vector<1x96xf32>
    %cst_85 = arith.constant 5.000000e-01 : f32
    %272 = vector.broadcast %cst_85 : f32 to vector<1x96xf32>
    %273 = arith.addf %271, %272 : vector<1x96xf32>
    %274 = vector.extract_strided_slice %273 {offsets = [0, 0], sizes = [1, 32], strides = [1, 1]} : vector<1x96xf32> to vector<1x32xf32>
    %275 = vector.extract_strided_slice %273 {offsets = [0, 32], sizes = [1, 32], strides = [1, 1]} : vector<1x96xf32> to vector<1x32xf32>
    %276 = vector.extract_strided_slice %273 {offsets = [0, 64], sizes = [1, 32], strides = [1, 1]} : vector<1x96xf32> to vector<1x32xf32>
    %277 = vector.extract_strided_slice %268 {offsets = [0, 96], sizes = [1, 32], strides = [1, 1]} : vector<1x128xf32> to vector<1x32xf32>
    %278 = arith.mulf %275, %236 : vector<1x32xf32>
    %279 = arith.mulf %274, %277 : vector<1x32xf32>
    %280 = arith.addf %278, %279 : vector<1x32xf32>
    %281 = math.tanh %280 : vector<1x32xf32>
    %282 = arith.mulf %276, %281 : vector<1x32xf32>
    %283 = tpu.concatenate %282, %9, %258, %10 in 1 : vector<1x32xf32>, vector<1x96xf32>, vector<1x64xf32>, vector<1x64xf32> -> vector<1x256xf32>
    %284 = arith.truncf %283 : vector<1x256xf32> to vector<1x256xbf16>
    %c64_86 = arith.constant 64 : index
    %c0_87 = arith.constant 0 : index
    %285 = vector.load %arg1[%c64_86, %c0_87] : memref<320x256xbf16, #tpu.memory_space<vmem>>, vector<256x256xbf16>
    %cst_88 = arith.constant dense<0.000000e+00> : vector<1x256xf32>
    %286 = tpu.matmul %284, %285, %cst_88 {dimension_numbers = #tpu.dot_dimension_numbers<[1], [0], [0], [1], [0, 0, 1, 1], [], []>} : vector<1x256xbf16>, vector<256x256xbf16>, vector<1x256xf32> -> vector<1x256xf32>
    %287 = arith.addf %286, %1 : vector<1x256xf32>
    %288 = math.tanh %287 : vector<1x256xf32>
    %289 = vector.extract_strided_slice %288 {offsets = [0, 0], sizes = [1, 192], strides = [1, 1]} : vector<1x256xf32> to vector<1x192xf32>
    %cst_89 = arith.constant 5.000000e-01 : f32
    %290 = vector.broadcast %cst_89 : f32 to vector<1x192xf32>
    %291 = arith.mulf %290, %289 : vector<1x192xf32>
    %cst_90 = arith.constant 5.000000e-01 : f32
    %292 = vector.broadcast %cst_90 : f32 to vector<1x192xf32>
    %293 = arith.addf %291, %292 : vector<1x192xf32>
    %294 = vector.extract_strided_slice %293 {offsets = [0, 0], sizes = [1, 64], strides = [1, 1]} : vector<1x192xf32> to vector<1x64xf32>
    %295 = vector.extract_strided_slice %293 {offsets = [0, 64], sizes = [1, 64], strides = [1, 1]} : vector<1x192xf32> to vector<1x64xf32>
    %296 = vector.extract_strided_slice %293 {offsets = [0, 128], sizes = [1, 64], strides = [1, 1]} : vector<1x192xf32> to vector<1x64xf32>
    %297 = vector.extract_strided_slice %288 {offsets = [0, 192], sizes = [1, 64], strides = [1, 1]} : vector<1x256xf32> to vector<1x64xf32>
    %298 = arith.mulf %295, %256 : vector<1x64xf32>
    %299 = arith.mulf %294, %297 : vector<1x64xf32>
    %300 = arith.addf %298, %299 : vector<1x64xf32>
    %301 = math.tanh %300 : vector<1x64xf32>
    %302 = arith.mulf %296, %301 : vector<1x64xf32>
    %303 = arith.mulf %302, %2 : vector<1x64xf32>
    %cst_91 = arith.constant dense<0.000000e+00> : vector<1xf32>
    %304 = vector.multi_reduction <add>, %303, %cst_91 [1] : vector<1x64xf32> to vector<1xf32>
    %305 = vector.shape_cast %304 : vector<1xf32> to vector<1x1xf32>
    %306 = arith.addf %305, %3 : vector<1x1xf32>
    %c6 = arith.constant 6 : index
    %c0_92 = arith.constant 0 : index
    %307 = vector.load %arg3[%c6, %c0_92] : memref<8x1xf32, #tpu.memory_space<vmem>>, vector<1x1xf32>
    tpu.vector_store %arg3[%c6, %c0_92], %306 {strides = array<i32>} : memref<8x1xf32, #tpu.memory_space<vmem>>, vector<1x1xf32>,
    %308 = arith.truncf %282 : vector<1x32xf32> to vector<1x32xbf16>
    %c32_93 = arith.constant 32 : index
    %c0_94 = arith.constant 0 : index
    %309 = vector.load %arg1[%c32_93, %c0_94] : memref<320x256xbf16, #tpu.memory_space<vmem>>, vector<32x128xbf16>
    %cst_95 = arith.constant dense<0.000000e+00> : vector<1x128xf32>
    %310 = tpu.matmul %308, %309, %cst_95 {dimension_numbers = #tpu.dot_dimension_numbers<[1], [0], [0], [1], [0, 0, 1, 1], [], []>} : vector<1x32xbf16>, vector<32x128xbf16>, vector<1x128xf32> -> vector<1x128xf32>
    %311 = arith.addf %8, %310 : vector<1x128xf32>
    %312 = math.tanh %311 : vector<1x128xf32>
    %313 = vector.extract_strided_slice %312 {offsets = [0, 0], sizes = [1, 96], strides = [1, 1]} : vector<1x128xf32> to vector<1x96xf32>
    %cst_96 = arith.constant 5.000000e-01 : f32
    %314 = vector.broadcast %cst_96 : f32 to vector<1x96xf32>
    %315 = arith.mulf %314, %313 : vector<1x96xf32>
    %cst_97 = arith.constant 5.000000e-01 : f32
    %316 = vector.broadcast %cst_97 : f32 to vector<1x96xf32>
    %317 = arith.addf %315, %316 : vector<1x96xf32>
    %318 = vector.extract_strided_slice %317 {offsets = [0, 0], sizes = [1, 32], strides = [1, 1]} : vector<1x96xf32> to vector<1x32xf32>
    %319 = vector.extract_strided_slice %317 {offsets = [0, 32], sizes = [1, 32], strides = [1, 1]} : vector<1x96xf32> to vector<1x32xf32>
    %320 = vector.extract_strided_slice %317 {offsets = [0, 64], sizes = [1, 32], strides = [1, 1]} : vector<1x96xf32> to vector<1x32xf32>
    %321 = vector.extract_strided_slice %312 {offsets = [0, 96], sizes = [1, 32], strides = [1, 1]} : vector<1x128xf32> to vector<1x32xf32>
    %322 = arith.mulf %319, %280 : vector<1x32xf32>
    %323 = arith.mulf %318, %321 : vector<1x32xf32>
    %324 = arith.addf %322, %323 : vector<1x32xf32>
    %325 = math.tanh %324 : vector<1x32xf32>
    %326 = arith.mulf %320, %325 : vector<1x32xf32>
    %327 = tpu.concatenate %326, %9, %302, %10 in 1 : vector<1x32xf32>, vector<1x96xf32>, vector<1x64xf32>, vector<1x64xf32> -> vector<1x256xf32>
    %328 = arith.truncf %327 : vector<1x256xf32> to vector<1x256xbf16>
    %c64_98 = arith.constant 64 : index
    %c0_99 = arith.constant 0 : index
    %329 = vector.load %arg1[%c64_98, %c0_99] : memref<320x256xbf16, #tpu.memory_space<vmem>>, vector<256x256xbf16>
    %cst_100 = arith.constant dense<0.000000e+00> : vector<1x256xf32>
    %330 = tpu.matmul %328, %329, %cst_100 {dimension_numbers = #tpu.dot_dimension_numbers<[1], [0], [0], [1], [0, 0, 1, 1], [], []>} : vector<1x256xbf16>, vector<256x256xbf16>, vector<1x256xf32> -> vector<1x256xf32>
    %331 = arith.addf %330, %1 : vector<1x256xf32>
    %332 = math.tanh %331 : vector<1x256xf32>
    %333 = vector.extract_strided_slice %332 {offsets = [0, 0], sizes = [1, 192], strides = [1, 1]} : vector<1x256xf32> to vector<1x192xf32>
    %cst_101 = arith.constant 5.000000e-01 : f32
    %334 = vector.broadcast %cst_101 : f32 to vector<1x192xf32>
    %335 = arith.mulf %334, %333 : vector<1x192xf32>
    %cst_102 = arith.constant 5.000000e-01 : f32
    %336 = vector.broadcast %cst_102 : f32 to vector<1x192xf32>
    %337 = arith.addf %335, %336 : vector<1x192xf32>
    %338 = vector.extract_strided_slice %337 {offsets = [0, 0], sizes = [1, 64], strides = [1, 1]} : vector<1x192xf32> to vector<1x64xf32>
    %339 = vector.extract_strided_slice %337 {offsets = [0, 64], sizes = [1, 64], strides = [1, 1]} : vector<1x192xf32> to vector<1x64xf32>
    %340 = vector.extract_strided_slice %337 {offsets = [0, 128], sizes = [1, 64], strides = [1, 1]} : vector<1x192xf32> to vector<1x64xf32>
    %341 = vector.extract_strided_slice %332 {offsets = [0, 192], sizes = [1, 64], strides = [1, 1]} : vector<1x256xf32> to vector<1x64xf32>
    %342 = arith.mulf %339, %300 : vector<1x64xf32>
    %343 = arith.mulf %338, %341 : vector<1x64xf32>
    %344 = arith.addf %342, %343 : vector<1x64xf32>
    %345 = math.tanh %344 : vector<1x64xf32>
    %346 = arith.mulf %340, %345 : vector<1x64xf32>
    %347 = arith.mulf %346, %2 : vector<1x64xf32>
    %cst_103 = arith.constant dense<0.000000e+00> : vector<1xf32>
    %348 = vector.multi_reduction <add>, %347, %cst_103 [1] : vector<1x64xf32> to vector<1xf32>
    %349 = vector.shape_cast %348 : vector<1xf32> to vector<1x1xf32>
    %350 = arith.addf %349, %3 : vector<1x1xf32>
    %c7 = arith.constant 7 : index
    %c0_104 = arith.constant 0 : index
    %351 = vector.load %arg3[%c7, %c0_104] : memref<8x1xf32, #tpu.memory_space<vmem>>, vector<1x1xf32>
    tpu.vector_store %arg3[%c7, %c0_104], %350 {strides = array<i32>} : memref<8x1xf32, #tpu.memory_space<vmem>>, vector<1x1xf32>,
    return
  }
}

</mosaic_0001>

<bundles_post_ra>
// kernel: tpu_custom_call.1
= control target key start
LH: loop header
LB: loop body
LE: loop exit
PB: predicated region body
PF: predicated region fallthrough
CT: control target
= control target key end

     0   :  { %8 = vsyncpa [#allocation3], 0  ;;  %s4132_s0 = inlined_call_operand.hbm [shape: f32[1,32], index: 0, kind: input, shape index: {}]   ;;  %s4133_s1 = inlined_call_operand.hbm [shape: bf16[320,256], index: 1, kind: input, shape index: {}]   ;;  %s4134_s2 = inlined_call_operand.hbm [shape: f32[4,256], index: 2, kind: input, shape index: {}]   ;;  %s4135_s3 = inlined_call_operand.vmem [shape: f32[8,1], index: 3, kind: output, shape index: {}]  }
   0x1   :  { %9 = vsyncpa [#allocation5], 0  ;;  %s3378_s12 = smov [#allocation4]   ;;  %s3308_s16 = scalar_lea.hbm %s4133_s1, 5120 }
   0x2   :  { %s25_s13 = sshll.u32 %s3378_s12, 4  ;;  %p3309_p0 = scmp.ne.s32.totalorder %s4133_s1, %s3308_s16  ;;  %s26_s13 = int_to_ptr.vmem [resolvable:$true] %s25_s13 }
   0x3   :  { %p3312_p1 = scmp.lt.u32.totalorder %s3308_s16, %s4133_s1 }
   0x5   :  { %p3314_p2 = pnand %p3312_p1, %p3309_p0 }
   0x7   :  { %3317 = shalt.err (!%p3314_p2)
}
   0x8   :  { %s3318_s21 = scalar_lea.vmem %s26_s13, 5120  ;;  %p3323_p4 = scmp.lt.s32.totalorder %s26_s13, %s26_s13 }
   0x9   :  { %p3319_p3 = scmp.ne.s32.totalorder %s26_s13, %s3318_s21  ;;  %p3324_p5 = scmp.lt.s32.totalorder %s3318_s21, %s3318_s21 }
   0xb   :  { %p3325_p6 = por %p3324_p5, %p3323_p4 }
   0xd   :  { %p3326_p7 = pnand %p3325_p6, %p3319_p3 }
   0xf   :  { %3329 = shalt.err (!%p3326_p7)
}
  0x10   :  { %s3379_s22 = smov 128   ;;  %s3380_s23 = smov 8  }
  0x11   :  { %31 = dma.hbm_to_vmem [thread:$0]  %s4133_s1, 5120, %s26_s13, [#allocation5], %s3379_s22, %s3379_s22, %s3380_s23  }
  0x12   :  { %s3381_s26 = smov [#allocation2]   ;;  %s3382_s28 = smov [#allocation6]  }
  0x13   :  { %s16_s27 = sshll.u32 %s3381_s26, 4  ;;  %s38_s29 = sshll.u32 %s3382_s28, 4  ;;  %s17_s27 = int_to_ptr.vmem [resolvable:$true] %s16_s27  ;;  %s39_s29 = int_to_ptr.vmem [resolvable:$true] %s38_s29 }
  0x14   :  { %s3330_s5 = scalar_lea.hbm %s4132_s0, 16 }
  0x15   :  { %p3331_p8 = scmp.ne.s32.totalorder %s4132_s0, %s3330_s5  ;;  %p3334_p9 = scmp.lt.u32.totalorder %s3330_s5, %s4132_s0 }
  0x17   :  { %p3336_p10 = pnand %p3334_p9, %p3331_p8 }
  0x19   :  { %3339 = shalt.err (!%p3336_p10)
}
  0x1a   :  { %s3340_s1 = scalar_lea.vmem %s17_s27, 16  ;;  %s3344_s10 = scalar_lea.vmem %s17_s27, 32 }
  0x1b   :  { %p3341_p11 = scmp.ne.s32.totalorder %s17_s27, %s3340_s1  ;;  %p3345_p12 = scmp.lt.s32.totalorder %s17_s27, %s17_s27 }
  0x1c   :  { %p3346_p13 = scmp.lt.s32.totalorder %s3344_s10, %s3340_s1 }
  0x1e   :  { %p3347_p0 = por %p3346_p13, %p3345_p12 }
  0x20   :  { %p3348_p1 = pnand %p3347_p0, %p3341_p11 }
  0x22   :  { %3351 = shalt.err (!%p3348_p1)
}
  0x23   :  { %19 = dma.hbm_to_vmem [thread:$0]  %s4132_s0, 16, %s17_s27, [#allocation3]  }
  0x24   :  { %s3352_s15 = scalar_lea.hbm %s4134_s2, 128 }
  0x25   :  { %p3353_p2 = scmp.ne.s32.totalorder %s4134_s2, %s3352_s15  ;;  %p3356_p3 = scmp.lt.u32.totalorder %s3352_s15, %s4134_s2 }
  0x27   :  { %p3358_p4 = pnand %p3356_p3, %p3353_p2 }
  0x29   :  { %3361 = shalt.err (!%p3358_p4)
}
  0x2a   :  { %s3362_s20 = scalar_lea.vmem %s39_s29, 128  ;;  %p3367_p6 = scmp.lt.s32.totalorder %s39_s29, %s39_s29 }
  0x2b   :  { %p3363_p5 = scmp.ne.s32.totalorder %s39_s29, %s3362_s20  ;;  %p3368_p7 = scmp.lt.s32.totalorder %s3362_s20, %s3362_s20 }
  0x2d   :  { %p3369_p8 = por %p3368_p7, %p3367_p6 }
  0x2f   :  { %p3370_p9 = pnand %p3369_p8, %p3363_p5 }
  0x31   :  { %3373 = shalt.err (!%p3370_p9)
}
  0x32   :  { %41 = dma.hbm_to_vmem [thread:$0]  %s4134_s2, 128, %s39_s29, [#allocation5]  }
  0x33   :  { %3374 = dma.done.wait [#allocation3], 16  }
  0x34   :  { %3375 = vsyncadd [#allocation3], 4294967280 }
  0x35   :  { %3376 = dma.done.wait [#allocation5], 5248  }
  0x36   :  { %3377 = vsyncadd [#allocation5], 4294962048  ;;  %v3383_v0 = vmov 0.0   ;;  %vm3384_vm0 = vmmov 0   ;;  %v3116_v1 = vld [vmem:[#allocation4] ss:$8 sps:$4 sm:$0xff]   ;;  %v162_v42 = vlaneseq }
  0x37   :  { %3042 = vmatprep.subr.bf16.mxu0 %v3383_v0  ;;  %3046 = vmatprep.mubr.msk.bf16.mxu0 %vm3384_vm0, %v3383_v0  ;;  %v3117_v2 = vld [vmem:[#allocation4 + $0x10] ss:$8 sps:$4 sm:$0xff]   ;;  %v57_v3 = vld [vmem:[#allocation2] sm:$0x1]  ;;  %vm75_vm1 = vcmask 261120   ;;  %s3385_s2 = smov 32  }
  0x38   :  { %3043 = vmatpush3.bf16.msra.mxu0 %v3116_v1  ;;  %v58_v4 = vpack.c.bf16 %v57_v3, %v57_v3  ;;  %v52_v5 = vld [vmem:[#allocation6] sm:$0x1]  ;;  %v3455_v17 = vld [vmem:[#allocation4 + $0x44] ss:$8 sps:$4 sm:$0xff]   ;;  %v3457_v18 = vld [vmem:[#allocation4 + $0x54] ss:$8 sps:$4 sm:$0xff]  }
  0x39   :  { %3044 = vmatprep.subr.bf16.mxu0 %v3383_v0  ;;  %v3453_v16 = vld [vmem:[#allocation4 + $0x40] ss:$8 sps:$4 sm:$0xff]   ;;  %v3386_v19 = vmov 0   ;;  %v3461_v20 = vld [vmem:[#allocation4 + $0x50] ss:$8 sps:$4 sm:$0xff]   ;;  %519 = vmatprep.subr.bf16.mxu1 %v3455_v17  ;;  %s3387_s22 = smov 64   ;;  %vm3622_vm4 = vmpackc.low %vm75_vm1, %vm75_vm1 }
  0x3a   :  { %520 = vmatpush1.bf16.msra.mxu1 %v3453_v16  ;;  %v3124_v25 = vld [vmem:[#allocation4 + $0x20] ss:$8 sps:$4 sm:$0xff]   ;;  %v3125_v27 = vld [vmem:[#allocation4 + $0x30] ss:$8 sps:$4 sm:$0xff]   ;;  %v3489_v43 = vshrl.u32 %v162_v42, 7  ;;  %vm323_vm2 = vcmask 523264  }
  0x3b   :  { %521 = vmatprep.subr.bf16.mxu1 %v3457_v18  ;;  %v3492_v45 = vld [vmem:[#allocation6 + $0x1] ss:$4 sm:$0x3]  ;;  %v3511_v56 = vld [vmem:[#allocation4 + $0x74] ss:$8 sps:$4 sm:$0xff]   ;;  %vm3609_vm3 = vmpackc.low %vm323_vm2, %vm323_vm2  ;;  %vm230_vm5 = vcmask 516096  }
  0x3c   :  { %3045 = vmatpush3.bf16.msra.mxu0 %v3117_v2  ;;  %v168_v44 = vsub.s32 1, %v3489_v43  ;;  %v3507_v54 = vld [vmem:[#allocation4 + $0x64] ss:$8 sps:$4 sm:$0xff]   ;;  %v3509_v55 = vld [vmem:[#allocation4 + $0x60] ss:$8 sps:$4 sm:$0xff]   ;;  %vm235_vm6 = vcmask 0  }
  0x3d   :  { %175 = vmatprep.subr.bf16.mxu0 %v3455_v17  ;;  %v3515_v57 = vld [vmem:[#allocation4 + $0x70] ss:$8 sps:$4 sm:$0xff]   ;;  %v3518_v58 = vld [vmem:[#allocation4 + $0x84] ss:$8 sps:$4 sm:$0xff]   ;;  %v3521_v59 = vld [vmem:[#allocation4 + $0x80] ss:$8 sps:$4 sm:$0xff]  }
  0x3e   :  { %522 = vmatpush1.bf16.msra.mxu1 %v3461_v20  ;;  %v3495_v47 = vrot.slane %v3492_v45, %v168_v44  ;;  %v3159_v60 = vld [vmem:[#allocation4 + $0x20] ss:$8 sps:$4 sm:$0xff]   ;;  %v3524_v61 = vld [vmem:[#allocation4 + $0x94] ss:$8 sps:$4 sm:$0xff]   ;;  %v3163_v62 = vld [vmem:[#allocation4 + $0x30] ss:$8 sps:$4 sm:$0xff]  }
  0x3f   :  { %3047 = vmatmul.mubr.msk.bf16.vlgmr.msra.gmra.mrb[0].mxu0 %vm75_vm1, %v58_v4  ;;  %523 = vmatprep.subr.bf16.mxu1 %v3507_v54  ;;  %v3528_v63 = vld [vmem:[#allocation4 + $0x90] ss:$8 sps:$4 sm:$0xff]   ;;  %v3531_v1 = vld [vmem:[#allocation4 + $0xa4] ss:$8 sps:$4 sm:$0xff]   ;;  %v3535_v2 = vld [vmem:[#allocation4 + $0xa0] ss:$8 sps:$4 sm:$0xff]  }
  0x40   :  { %207 = vmatprep.mubr.bf16.mxu0 %v3386_v19  ;;  %176 = vmatpush1.bf16.msra.mxu0 %v3453_v16  ;;  %v3538_v3 = vld [vmem:[#allocation4 + $0xb4] ss:$8 sps:$4 sm:$0xff]   ;;  %v3541_v4 = vld [vmem:[#allocation4 + $0xb0] ss:$8 sps:$4 sm:$0xff]  }
  0x41   :  { %177 = vmatprep.subr.bf16.mxu0 %v3457_v18  ;;  %v3574_v19 = vld [vmem:[#allocation4 + $0x114] ss:$8 sps:$4 sm:$0xff]  }
  0x42   :  { %524 = vmatpush1.bf16.msra.mxu1 %v3509_v55 }
  0x43   :  { %525 = vmatprep.subr.bf16.mxu1 %v3511_v56 }
  0x44   :  { %178 = vmatpush1.bf16.msra.mxu0 %v3461_v20 }
  0x45   :  { %3050 = vmatprep.subr.bf16.mxu0 %v3383_v0 }
  0x46   :  { %526 = vmatpush1.bf16.msra.mxu1 %v3515_v57 }
  0x47   :  { %527 = vmatprep.subr.bf16.mxu1 %v3518_v58 }
  0x4a   :  { %528 = vmatpush1.bf16.msra.mxu1 %v3521_v59 }
  0x4b   :  { %529 = vmatprep.subr.bf16.mxu1 %v3524_v61 }
  0x4e   :  { %530 = vmatpush1.bf16.msra.mxu1 %v3528_v63 }
  0x4f   :  { %531 = vmatprep.subr.bf16.mxu1 %v3531_v1 }
  0x52   :  { %532 = vmatpush1.bf16.msra.mxu1 %v3535_v2 }
  0x53   :  { %533 = vmatprep.subr.bf16.mxu1 %v3538_v3 }
  0x56   :  { %534 = vmatpush1.bf16.msra.mxu1 %v3541_v4 }
 0x112   :  { %v113_v6 = vpop.f32.mrb[0].mxu0 }
 0x113   :  { %v3449_v7 = vadd.f32 %v113_v6, %v52_v5  ;;  %v3048_v8 = vpop.f32.mrb[1].mxu0  ;;  %v3544_v5 = vld [vmem:[#allocation4 + $0xc4] ss:$8 sps:$4 sm:$0xff]   ;;  %v3547_v6 = vld [vmem:[#allocation4 + $0xc0] ss:$8 sps:$4 sm:$0xff]  }
 0x114   :  { %v116_v9 = vpop.f32.mrb[2].mxu0  ;;  %535 = vmatprep.subr.bf16.mxu1 %v3544_v5  ;;  %v3550_v8 = vld [vmem:[#allocation4 + $0xd4] ss:$8 sps:$4 sm:$0xff]  }
 0x115   :  { %v3049_v10 = vpop.f32.mrb[3].mxu0  ;;  %3228 = vtanh.f32 %v3449_v7  ;;  %536 = vmatpush1.bf16.msra.mxu1 %v3547_v6  ;;  %v3553_v9 = vld [vmem:[#allocation4 + $0xd0] ss:$8 sps:$4 sm:$0xff]  }
 0x116   :  { %537 = vmatprep.subr.bf16.mxu1 %v3550_v8  ;;  %v3556_v10 = vld [vmem:[#allocation4 + $0xe4] ss:$8 sps:$4 sm:$0xff]  }
 0x119   :  { %538 = vmatpush1.bf16.msra.mxu1 %v3553_v9 }
 0x11a   :  { %539 = vmatprep.subr.bf16.mxu1 %v3556_v10 }
 0x11f   :  { %v3229_v11 = vpop.eup %3228 }
 0x120   :  { %123 = vrot.lane.b32.xlu0 %v3229_v11, %s3385_s2  ;;  %v120_v12 = vmul.f32 0.5, %v3229_v11  ;;  %v3559_v11 = vld [vmem:[#allocation4 + $0xe0] ss:$8 sps:$4 sm:$0xff]  }
 0x121   :  { %540 = vmatpush1.bf16.msra.mxu1 %v3559_v11 }
 0x122   :  { %v121_v13 = vadd.f32 0.5, %v120_v12  ;;  %v3562_v12 = vld [vmem:[#allocation4 + $0xf4] ss:$8 sps:$4 sm:$0xff]  }
 0x123   :  { %541 = vmatprep.subr.bf16.mxu1 %v3562_v12 }
 0x192   :  { %v124_v14 = vpop.permute.xlu0 %123 }
 0x193   :  { %v126_v15 = vmul.f32 %v124_v14, %v121_v13  ;;  %v3568_v14 = vld [vmem:[#allocation4 + $0x104] ss:$8 sps:$4 sm:$0xff]  }
 0x195   :  { %3230 = vtanh.f32 %v126_v15 }
 0x19f   :  { %v3231_v21 = vpop.eup %3230 }
 0x1a0   :  { %129 = vrot.lane.b32.xlu0 %v3231_v21, %s3387_s22  ;;  %v3577_v21 = vld [vmem:[#allocation4 + $0x110] ss:$8 sps:$4 sm:$0xff]  }
 0x1a4   :  { %298 = vrot.lane.b32.xlu0 %v126_v15, %s3385_s2  ;;  %v3571_v15 = vld [vmem:[#allocation4 + $0x100] ss:$8 sps:$4 sm:$0xff]  }
 0x212   :  { %v130_v22 = vpop.permute.xlu0 %129 }
 0x213   :  { %v132_v23 = vmul.f32 %v130_v22, %v121_v13  ;;  %v3565_v13 = vld [vmem:[#allocation4 + $0xf0] ss:$8 sps:$4 sm:$0xff]   ;;  %v3580_v22 = vld [vmem:[#allocation4 + $0x124] ss:$8 sps:$4 sm:$0xff]  }
 0x214   :  { %542 = vmatpush1.bf16.msra.mxu1 %v3565_v13 }
 0x215   :  { %v133_v24 = vpack.c.bf16 %v132_v23, %v132_v23  ;;  %543 = vmatprep.subr.bf16.mxu1 %v3568_v14  ;;  %v3583_v23 = vld [vmem:[#allocation4 + $0x120] ss:$8 sps:$4 sm:$0xff]  }
 0x216   :  { %v299_v46 = vpop.permute.xlu0 %298 }
 0x217   :  { %139 = vrot.lane.b32.xlu1 %v133_v24, %s3387_s22  ;;  %v164_v24 = vsub.s32 0, %v3489_v43 }
 0x218   :  { %544 = vmatpush1.bf16.msra.mxu1 %v3571_v15 }
 0x219   :  { %545 = vmatprep.subr.bf16.mxu1 %v3574_v19 }
 0x21c   :  { %546 = vmatpush1.bf16.msra.mxu1 %v3577_v21 }
 0x21d   :  { %547 = vmatprep.subr.bf16.mxu1 %v3580_v22 }
 0x220   :  { %548 = vmatpush1.bf16.msra.mxu1 %v3583_v23 }
 0x289   :  { %v140_v26 = vpop.permute.xlu1 %139 }
 0x28a   :  { %2730 = vmatmul.mubr.msk.bf16.vlgmr.msra.gmra.mrb[4].mxu0 %vm75_vm1, %v140_v26 }
 0x28b   :  { %3051 = vmatpush3.bf16.msra.mxu0 %v3124_v25  ;;  %3054 = vmatprep.mubr.msk.bf16.mxu0 %vm3384_vm0, %v3383_v0  ;;  %v3589_v25 = vrot.slane %v3492_v45, %v164_v24 }
 0x28c   :  { %3052 = vmatprep.subr.bf16.mxu0 %v3383_v0 }
 0x28f   :  { %3053 = vmatpush3.bf16.msra.mxu0 %v3125_v27  ;;  %v3593_v27 = vld [vmem:[#allocation4 + $0x134] ss:$8 sps:$4 sm:$0xff]  }
 0x290   :  { %3058 = vmatprep.subr.bf16.mxu0 %v3383_v0  ;;  %549 = vmatprep.subr.bf16.mxu1 %v3593_v27 }
 0x292   :  { %3055 = vmatmul.mubr.msk.bf16.vlgmr.msra.gmra.mrb[8].mxu0 %vm75_vm1, %v140_v26 }
 0x293   :  { %3062 = vmatprep.mubr.msk.bf16.mxu0 %vm3384_vm0, %v3383_v0  ;;  %3059 = vmatpush3.bf16.msra.mxu0 %v3159_v60 }
 0x294   :  { %3060 = vmatprep.subr.bf16.mxu0 %v3383_v0 }
 0x297   :  { %3061 = vmatpush3.bf16.msra.mxu0 %v3163_v62 }
 0x298   :  { %877 = vmatprep.subr.bf16.mxu0 %v3455_v17 }
 0x35d   :  { %v3481_v28 = vpop.f32.mrb[4].mxu0 }
 0x35e   :  { %v211_v29 = vpop.f32.mrb[5].mxu0  ;;  %v210_v26 = vadd.f32 %v3481_v28, %v3589_v25 }
 0x35f   :  { %v213_v30 = vpop.f32.mrb[6].mxu0  ;;  %v212_v51 = vadd.f32 %v211_v29, %v3495_v47  ;;  %v3595_v29 = vld [vmem:[#allocation4 + $0x130] ss:$8 sps:$4 sm:$0xff]  }
 0x360   :  { %v214_v31 = vpop.f32.mrb[7].mxu0  ;;  %550 = vmatpush1.bf16.msra.mxu1 %v3595_v29 }
 0x361   :  { %1231 = vmatprep.subr.bf16.mxu1 %v3455_v17 }
 0x365   :  { %v287_v32 = vpop.f32.mrb[8].mxu0 }
 0x366   :  { %v293_v33 = vadd.f32 %v287_v32, %v3449_v7  ;;  %v3056_v34 = vpop.f32.mrb[9].mxu0 }
 0x367   :  { %v290_v35 = vpop.f32.mrb[10].mxu0 }
 0x368   :  { %3232 = vtanh.f32 %v293_v33  ;;  %v3057_v36 = vpop.f32.mrb[11].mxu0 }
 0x372   :  { %v3233_v37 = vpop.eup %3232 }
 0x373   :  { %303 = vrot.lane.b32.xlu1 %v3233_v37, %s3385_s2  ;;  %v295_v38 = vmul.f32 0.5, %v3233_v37 }
 0x375   :  { %v3485_v39 = vadd.f32 0.5, %v295_v38 }
 0x377   :  { %v301_v48 = vmul.f32 %v299_v46, %v3485_v39 }
 0x3e5   :  { %v304_v40 = vpop.permute.xlu1 %303 }
 0x3e6   :  { %v306_v41 = vmul.f32 %v304_v40, %v3485_v39 }
 0x3e8   :  { %308 = vrot.lane.b32.xlu1 %v306_v41, %s3385_s2 }
 0x45a   :  { %v309_v49 = vpop.permute.xlu1 %308 }
 0x45b   :  { %v3498_v50 = vadd.f32 %v309_v49, %v301_v48 }
 0x45d   :  { %3234 = vtanh.f32 %v3498_v50 }
 0x45e   :  { %3236 = vtanh.f32 %v212_v51 }
 0x45f   :  { %3238 = vtanh.f32 %v210_v26 }
 0x467   :  { %v3235_v52 = vpop.eup %3234 }
 0x468   :  { %314 = vrot.lane.b32.xlu0 %v3235_v52, %s3385_s2  ;;  %v3503_v53 = vpop.eup %3236 }
 0x469   :  { %v3239_v30 = vpop.eup %3238  ;;  %v219_v37 = vmul.f32 0.5, %v3503_v53 }
 0x46a   :  { %v218_v31 = vmul.f32 0.5, %v3239_v30 }
 0x46b   :  { %v221_v38 = vadd.f32 0.5, %v219_v37 }
 0x46c   :  { %223 = vrot.lane.b32.xlu0 %v3503_v53, %s3387_s22  ;;  %v220_v35 = vadd.f32 0.5, %v218_v31 }
 0x4da   :  { %v315_v32 = vpop.permute.xlu0 %314 }
 0x4db   :  { %v317_v33 = vmul.f32 %v315_v32, %v3485_v39 }
 0x4dd   :  { %v593_v34 = vpack.c.bf16 %v317_v33, %v317_v33 }
 0x4de   :  { %v224_v36 = vpop.permute.xlu0 %223 }
 0x4df   :  { %v3601_v28 = vmul.f32 %v224_v36, %v220_v35  ;;  %599 = vrot.lane.b32.xlu1 %v593_v34, %s3387_s22 }
 0x4e1   :  { %3240 = vtanh.f32 %v3601_v28 }
 0x4e3   :  { %319 = vrot.lane.b32.xlu1 %v317_v33, %s3387_s22 }
 0x4eb   :  { %v3241_v17 = vpop.eup %3240 }
 0x4ec   :  { %v3607_v40 = vmul.f32 %v3241_v17, %v221_v38 }
 0x4ee   :  { %v2767_v41 = vpack.c.bf16 %v3607_v40, %v3607_v40 }
 0x4f0   :  { %2768 = vmatprep.mubr.msk.bf16.mxu1 %vm3609_vm3, %v2767_v41 }
 0x551   :  { %v600_v42 = vpop.permute.xlu1 %599 }
 0x552   :  { %3063 = vmatmul.mubr.msk.bf16.vlgmr.msra.gmra.mrb[12].mxu0 %vm75_vm1, %v600_v42 }
 0x553   :  { %878 = vmatpush1.bf16.msra.mxu0 %v3453_v16 }
 0x554   :  { %879 = vmatprep.subr.bf16.mxu0 %v3457_v18 }
 0x555   :  { %v320_v43 = vpop.permute.xlu1 %319 }
 0x556   :  { %v2770_v45 = vpack.c.bf16 %v320_v43, %v320_v43 }
 0x557   :  { %880 = vmatpush1.bf16.msra.mxu0 %v3461_v20 }
 0x558   :  { %2771 = vmatmul.mubr.msk.bf16.vlgmr.msra.gmra.mrb[0].mxu1 %vm3622_vm4, %v2770_v45  ;;  %881 = vmatprep.subr.bf16.mxu0 %v3507_v54 }
 0x559   :  { %1232 = vmatpush1.bf16.msra.mxu1 %v3453_v16 }
 0x55a   :  { %1233 = vmatprep.subr.bf16.mxu1 %v3457_v18 }
 0x55b   :  { %882 = vmatpush1.bf16.msra.mxu0 %v3509_v55 }
 0x55c   :  { %883 = vmatprep.subr.bf16.mxu0 %v3511_v56 }
 0x55d   :  { %1234 = vmatpush1.bf16.msra.mxu1 %v3461_v20 }
 0x55e   :  { %1235 = vmatprep.subr.bf16.mxu1 %v3507_v54 }
 0x55f   :  { %884 = vmatpush1.bf16.msra.mxu0 %v3515_v57 }
 0x560   :  { %885 = vmatprep.subr.bf16.mxu0 %v3518_v58 }
 0x561   :  { %1236 = vmatpush1.bf16.msra.mxu1 %v3509_v55 }
 0x562   :  { %1237 = vmatprep.subr.bf16.mxu1 %v3511_v56 }
 0x563   :  { %886 = vmatpush1.bf16.msra.mxu0 %v3521_v59 }
 0x564   :  { %887 = vmatprep.subr.bf16.mxu0 %v3524_v61 }
 0x565   :  { %1238 = vmatpush1.bf16.msra.mxu1 %v3515_v57 }
 0x566   :  { %1239 = vmatprep.subr.bf16.mxu1 %v3518_v58 }
 0x567   :  { %888 = vmatpush1.bf16.msra.mxu0 %v3528_v63 }
 0x568   :  { %889 = vmatprep.subr.bf16.mxu0 %v3531_v1 }
 0x569   :  { %1240 = vmatpush1.bf16.msra.mxu1 %v3521_v59 }
 0x56a   :  { %1241 = vmatprep.subr.bf16.mxu1 %v3524_v61 }
 0x56b   :  { %890 = vmatpush1.bf16.msra.mxu0 %v3535_v2 }
 0x56c   :  { %891 = vmatprep.subr.bf16.mxu0 %v3538_v3 }
 0x56d   :  { %1242 = vmatpush1.bf16.msra.mxu1 %v3528_v63 }
 0x56e   :  { %1243 = vmatprep.subr.bf16.mxu1 %v3531_v1 }
 0x56f   :  { %892 = vmatpush1.bf16.msra.mxu0 %v3541_v4 }
 0x570   :  { %893 = vmatprep.subr.bf16.mxu0 %v3544_v5 }
 0x571   :  { %1244 = vmatpush1.bf16.msra.mxu1 %v3535_v2 }
 0x572   :  { %1245 = vmatprep.subr.bf16.mxu1 %v3538_v3 }
 0x573   :  { %894 = vmatpush1.bf16.msra.mxu0 %v3547_v6 }
 0x574   :  { %895 = vmatprep.subr.bf16.mxu0 %v3550_v8 }
 0x575   :  { %1246 = vmatpush1.bf16.msra.mxu1 %v3541_v4 }
 0x576   :  { %1247 = vmatprep.subr.bf16.mxu1 %v3544_v5 }
 0x577   :  { %896 = vmatpush1.bf16.msra.mxu0 %v3553_v9 }
 0x578   :  { %897 = vmatprep.subr.bf16.mxu0 %v3556_v10 }
 0x579   :  { %1248 = vmatpush1.bf16.msra.mxu1 %v3547_v6 }
 0x57a   :  { %1249 = vmatprep.subr.bf16.mxu1 %v3550_v8 }
 0x57b   :  { %898 = vmatpush1.bf16.msra.mxu0 %v3559_v11 }
 0x57c   :  { %899 = vmatprep.subr.bf16.mxu0 %v3562_v12 }
 0x57d   :  { %1250 = vmatpush1.bf16.msra.mxu1 %v3553_v9 }
 0x57e   :  { %1251 = vmatprep.subr.bf16.mxu1 %v3556_v10 }
 0x57f   :  { %900 = vmatpush1.bf16.msra.mxu0 %v3565_v13 }
 0x580   :  { %901 = vmatprep.subr.bf16.mxu0 %v3568_v14 }
 0x581   :  { %1252 = vmatpush1.bf16.msra.mxu1 %v3559_v11 }
 0x582   :  { %1253 = vmatprep.subr.bf16.mxu1 %v3562_v12 }
 0x583   :  { %902 = vmatpush1.bf16.msra.mxu0 %v3571_v15 }
 0x584   :  { %903 = vmatprep.subr.bf16.mxu0 %v3574_v19 }
 0x585   :  { %1254 = vmatpush1.bf16.msra.mxu1 %v3565_v13 }
 0x586   :  { %1255 = vmatprep.subr.bf16.mxu1 %v3568_v14 }
 0x587   :  { %904 = vmatpush1.bf16.msra.mxu0 %v3577_v21 }
 0x588   :  { %905 = vmatprep.subr.bf16.mxu0 %v3580_v22 }
 0x589   :  { %1256 = vmatpush1.bf16.msra.mxu1 %v3571_v15 }
 0x58a   :  { %1257 = vmatprep.subr.bf16.mxu1 %v3574_v19 }
 0x58b   :  { %906 = vmatpush1.bf16.msra.mxu0 %v3583_v23 }
 0x58c   :  { %907 = vmatprep.subr.bf16.mxu0 %v3593_v27 }
 0x58d   :  { %1258 = vmatpush1.bf16.msra.mxu1 %v3577_v21 }
 0x58e   :  { %1259 = vmatprep.subr.bf16.mxu1 %v3580_v22 }
 0x58f   :  { %908 = vmatpush1.bf16.msra.mxu0 %v3595_v29 }
 0x590   :  { %3066 = vmatprep.subr.bf16.mxu0 %v3383_v0 }
 0x591   :  { %1260 = vmatpush1.bf16.msra.mxu1 %v3583_v23 }
 0x592   :  { %1261 = vmatprep.subr.bf16.mxu1 %v3593_v27 }
 0x595   :  { %1262 = vmatpush1.bf16.msra.mxu1 %v3595_v29 }
 0x625   :  { %v650_v16 = vpop.f32.mrb[12].mxu0 }
 0x626   :  { %v656_v18 = vadd.f32 %v650_v16, %v3449_v7  ;;  %v3064_v20 = vpop.f32.mrb[13].mxu0 }
 0x627   :  { %v653_v46 = vpop.f32.mrb[14].mxu0 }
 0x628   :  { %3242 = vtanh.f32 %v656_v18  ;;  %v3065_v48 = vpop.f32.mrb[15].mxu0 }
 0x62b   :  { %v553_v49 = vpop.f32.mrb[0].mxu1 }
 0x62c   :  { %v555_v51 = vpop.f32.mrb[1].mxu1  ;;  %v554_v26 = vadd.f32 %v553_v49, %v3589_v25 }
 0x62d   :  { %v556_v52 = vadd.f32 %v555_v51, %v3495_v47  ;;  %v557_v53 = vpop.f32.mrb[2].mxu1 }
 0x62e   :  { %v558_v60 = vpop.f32.mrb[3].mxu1 }
 0x62f   :  { %3244 = vtanh.f32 %v556_v52 }
 0x630   :  { %3246 = vtanh.f32 %v554_v26  ;;  %v3170_v26 = vld [vmem:[#allocation4 + $0x20] ss:$8 sps:$4 sm:$0xff]  }
 0x632   :  { %v3243_v62 = vpop.eup %3242 }
 0x633   :  { %662 = vrot.lane.b32.xlu0 %v3243_v62, %s3385_s2  ;;  %v658_v30 = vmul.f32 0.5, %v3243_v62 }
 0x635   :  { %v659_v32 = vadd.f32 0.5, %v658_v30 }
 0x637   :  { %v660_v17 = vmul.f32 %v659_v32, %v3498_v50 }
 0x639   :  { %v3245_v24 = vpop.eup %3244 }
 0x63a   :  { %572 = vrot.lane.b32.xlu1 %v3245_v24, %s3387_s22  ;;  %v3247_v31 = vpop.eup %3246  ;;  %v563_v48 = vmul.f32 0.5, %v3245_v24  ;;  %v3171_v24 = vld [vmem:[#allocation4 + $0x30] ss:$8 sps:$4 sm:$0xff]  }
 0x63b   :  { %v562_v35 = vmul.f32 0.5, %v3247_v31 }
 0x63c   :  { %v565_v51 = vadd.f32 0.5, %v563_v48 }
 0x63d   :  { %v564_v36 = vadd.f32 0.5, %v562_v35 }
 0x63e   :  { %567 = vrot.lane.b32.xlu1 %v3601_v28, %s3387_s22 }
 0x6a5   :  { %v663_v33 = vpop.permute.xlu0 %662 }
 0x6a6   :  { %v665_v34 = vmul.f32 %v663_v33, %v659_v32 }
 0x6a8   :  { %667 = vrot.lane.b32.xlu0 %v665_v34, %s3385_s2 }
 0x6ac   :  { %v573_v37 = vpop.permute.xlu1 %572 }
 0x6ad   :  { %v575_v38 = vmul.f32 %v573_v37, %v564_v36 }
 0x6af   :  { %577 = vrot.lane.b32.xlu0 %v575_v38, %s3387_s22 }
 0x6b0   :  { %v568_v42 = vpop.permute.xlu1 %567 }
 0x6b1   :  { %v570_v43 = vmul.f32 %v568_v42, %v564_v36 }
 0x71a   :  { %v668_v41 = vpop.permute.xlu0 %667 }
 0x71b   :  { %v3699_v28 = vadd.f32 %v668_v41, %v660_v17 }
 0x71d   :  { %3248 = vtanh.f32 %v3699_v28 }
 0x721   :  { %v578_v45 = vpop.permute.xlu0 %577 }
 0x722   :  { %v3702_v16 = vadd.f32 %v578_v45, %v570_v43 }
 0x724   :  { %3250 = vtanh.f32 %v3702_v16 }
 0x727   :  { %v3249_v18 = vpop.eup %3248 }
 0x728   :  { %673 = vrot.lane.b32.xlu1 %v3249_v18, %s3385_s2 }
 0x72e   :  { %v3251_v20 = vpop.eup %3250 }
 0x72f   :  { %583 = vrot.lane.b32.xlu0 %v3251_v20, %s3387_s22 }
 0x79a   :  { %v674_v46 = vpop.permute.xlu1 %673 }
 0x79b   :  { %v676_v50 = vmul.f32 %v674_v46, %v659_v32 }
 0x79d   :  { %v947_v49 = vpack.c.bf16 %v676_v50, %v676_v50  ;;  %678 = vrot.lane.b32.xlu1 %v676_v50, %s3387_s22 }
 0x79f   :  { %953 = vrot.lane.b32.xlu0 %v947_v49, %s3387_s22 }
 0x7a1   :  { %v584_v52 = vpop.permute.xlu0 %583 }
 0x7a2   :  { %v3709_v53 = vmul.f32 %v584_v52, %v565_v51 }
 0x7a4   :  { %v2808_v60 = vpack.c.bf16 %v3709_v53, %v3709_v53 }
 0x7a6   :  { %2809 = vmatprep.mubr.msk.bf16.mxu0 %vm3609_vm3, %v2808_v60 }
 0x80f   :  { %v679_v62 = vpop.permute.xlu1 %678 }
 0x810   :  { %v2811_v30 = vpack.c.bf16 %v679_v62, %v679_v62 }
 0x811   :  { %v954_v31 = vpop.permute.xlu0 %953 }
 0x812   :  { %2812 = vmatmul.mubr.msk.bf16.vlgmr.msra.gmra.mrb[16].mxu0 %vm3622_vm4, %v2811_v30 }
 0x813   :  { %3067 = vmatpush3.bf16.msra.mxu0 %v3170_v26  ;;  %3070 = vmatprep.mubr.msk.bf16.mxu0 %vm3384_vm0, %v3383_v0 }
 0x814   :  { %3068 = vmatprep.subr.bf16.mxu0 %v3383_v0 }
 0x817   :  { %3069 = vmatpush3.bf16.msra.mxu0 %v3171_v24 }
 0x818   :  { %3074 = vmatprep.subr.bf16.mxu0 %v3383_v0 }
 0x81a   :  { %3071 = vmatmul.mubr.msk.bf16.vlgmr.msra.gmra.mrb[20].mxu0 %vm75_vm1, %v954_v31 }
 0x81b   :  { %3078 = vmatprep.mubr.msk.bf16.mxu0 %vm3384_vm0, %v3383_v0 }
 0x8e5   :  { %v911_v32 = vpop.f32.mrb[16].mxu0 }
 0x8e6   :  { %v913_v33 = vpop.f32.mrb[17].mxu0  ;;  %v912_v18 = vadd.f32 %v911_v32, %v3589_v25 }
 0x8e7   :  { %v915_v34 = vpop.f32.mrb[18].mxu0  ;;  %v914_v41 = vadd.f32 %v913_v33, %v3495_v47 }
 0x8e8   :  { %v916_v35 = vpop.f32.mrb[19].mxu0  ;;  %v3172_v34 = vld [vmem:[#allocation4 + $0x20] ss:$8 sps:$4 sm:$0xff]  }
 0x8e9   :  { %3075 = vmatpush3.bf16.msra.mxu0 %v3172_v34  ;;  %v3173_v35 = vld [vmem:[#allocation4 + $0x30] ss:$8 sps:$4 sm:$0xff]  }
 0x8ea   :  { %3076 = vmatprep.subr.bf16.mxu0 %v3383_v0 }
 0x8ed   :  { %v1004_v36 = vpop.f32.mrb[20].mxu0  ;;  %3077 = vmatpush3.bf16.msra.mxu0 %v3173_v35 }
 0x8ee   :  { %v1010_v37 = vadd.f32 %v1004_v36, %v3449_v7  ;;  %v3072_v38 = vpop.f32.mrb[21].mxu0 }
 0x8ef   :  { %v1007_v17 = vpop.f32.mrb[22].mxu0 }
 0x8f0   :  { %3252 = vtanh.f32 %v1010_v37  ;;  %v3073_v42 = vpop.f32.mrb[23].mxu0 }
 0x8f1   :  { %3254 = vtanh.f32 %v914_v41 }
 0x8f2   :  { %3256 = vtanh.f32 %v912_v18 }
 0x8fa   :  { %v3253_v43 = vpop.eup %3252 }
 0x8fb   :  { %1016 = vrot.lane.b32.xlu1 %v3253_v43, %s3385_s2  ;;  %v3255_v45 = vpop.eup %3254  ;;  %v1012_v20 = vmul.f32 0.5, %v3253_v43 }
 0x8fc   :  { %v3257_v46 = vpop.eup %3256 }
 0x8fd   :  { %v1013_v50 = vadd.f32 0.5, %v1012_v20  ;;  %v920_v48 = vmul.f32 0.5, %v3257_v46 }
 0x8ff   :  { %926 = vrot.lane.b32.xlu1 %v3255_v45, %s3387_s22  ;;  %v922_v52 = vadd.f32 0.5, %v920_v48  ;;  %v1014_v26 = vmul.f32 %v1013_v50, %v3699_v28  ;;  %v921_v28 = vmul.f32 0.5, %v3255_v45 }
 0x901   :  { %v924_v31 = vmul.f32 %v922_v52, %v3702_v16  ;;  %v923_v16 = vadd.f32 0.5, %v921_v28 }
 0x96d   :  { %v1017_v49 = vpop.permute.xlu1 %1016 }
 0x96e   :  { %v1019_v51 = vmul.f32 %v1017_v49, %v1013_v50 }
 0x970   :  { %1021 = vrot.lane.b32.xlu0 %v1019_v51, %s3385_s2 }
 0x971   :  { %v927_v60 = vpop.permute.xlu1 %926 }
 0x972   :  { %v929_v62 = vmul.f32 %v927_v60, %v922_v52 }
 0x974   :  { %931 = vrot.lane.b32.xlu1 %v929_v62, %s3387_s22 }
 0x9e2   :  { %v1022_v30 = vpop.permute.xlu0 %1021 }
 0x9e3   :  { %v1024_v24 = vadd.f32 %v1022_v30, %v1014_v26 }
 0x9e5   :  { %3258 = vtanh.f32 %v1024_v24 }
 0x9e6   :  { %v932_v32 = vpop.permute.xlu1 %931 }
 0x9e7   :  { %v934_v33 = vadd.f32 %v932_v32, %v924_v31 }
 0x9e9   :  { %3260 = vtanh.f32 %v934_v33 }
 0x9ef   :  { %v3259_v36 = vpop.eup %3258 }
 0x9f0   :  { %1027 = vrot.lane.b32.xlu0 %v3259_v36, %s3385_s2 }
 0x9f3   :  { %v3261_v37 = vpop.eup %3260 }
 0x9f4   :  { %937 = vrot.lane.b32.xlu1 %v3261_v37, %s3387_s22 }
 0xa62   :  { %v1028_v38 = vpop.permute.xlu0 %1027 }
 0xa63   :  { %v1030_v17 = vmul.f32 %v1028_v38, %v1013_v50 }
 0xa65   :  { %v1301_v41 = vpack.c.bf16 %v1030_v17, %v1030_v17 }
 0xa66   :  { %v938_v42 = vpop.permute.xlu1 %937 }
 0xa67   :  { %v3736_v43 = vmul.f32 %v938_v42, %v923_v16  ;;  %1307 = vrot.lane.b32.xlu0 %v1301_v41, %s3387_s22 }
 0xa69   :  { %v2849_v18 = vpack.c.bf16 %v3736_v43, %v3736_v43 }
 0xa6b   :  { %2850 = vmatprep.mubr.msk.bf16.mxu1 %vm3609_vm3, %v2849_v18  ;;  %1032 = vrot.lane.b32.xlu0 %v1030_v17, %s3387_s22 }
 0xad9   :  { %v1308_v20 = vpop.permute.xlu0 %1307 }
 0xada   :  { %3079 = vmatmul.mubr.msk.bf16.vlgmr.msra.gmra.mrb[24].mxu0 %vm75_vm1, %v1308_v20 }
 0xadd   :  { %v1033_v45 = vpop.permute.xlu0 %1032 }
 0xade   :  { %v2852_v46 = vpack.c.bf16 %v1033_v45, %v1033_v45 }
 0xae0   :  { %2853 = vmatmul.mubr.msk.bf16.vlgmr.msra.gmra.mrb[4].mxu1 %vm3622_vm4, %v2852_v46 }
 0xbad   :  { %v1358_v50 = vpop.f32.mrb[24].mxu0 }
 0xbae   :  { %v1364_v48 = vadd.f32 %v1358_v50, %v3449_v7  ;;  %v3080_v49 = vpop.f32.mrb[25].mxu0 }
 0xbaf   :  { %v1361_v51 = vpop.f32.mrb[26].mxu0 }
 0xbb0   :  { %3262 = vtanh.f32 %v1364_v48  ;;  %v3081_v52 = vpop.f32.mrb[27].mxu0  ;;  %v3767_v51 = vld [vmem:[#allocation4 + $0x40] ss:$8 sps:$4 sm:$0xff]  }
 0xbb1   :  { %v3769_v52 = vld [vmem:[#allocation4 + $0x44] ss:$8 sps:$4 sm:$0xff]  }
 0xbb2   :  { %1585 = vmatprep.subr.bf16.mxu0 %v3769_v52  ;;  %1939 = vmatprep.subr.bf16.mxu1 %v3769_v52 }
 0xbb3   :  { %v1265_v60 = vpop.f32.mrb[4].mxu1  ;;  %1586 = vmatpush1.bf16.msra.mxu0 %v3767_v51  ;;  %1940 = vmatpush1.bf16.msra.mxu1 %v3767_v51 }
 0xbb4   :  { %v1267_v62 = vpop.f32.mrb[5].mxu1  ;;  %v1266_v35 = vadd.f32 %v1265_v60, %v3589_v25 }
 0xbb5   :  { %v1268_v26 = vadd.f32 %v1267_v62, %v3495_v47  ;;  %v1269_v30 = vpop.f32.mrb[6].mxu1  ;;  %v3771_v62 = vld [vmem:[#allocation4 + $0x54] ss:$8 sps:$4 sm:$0xff]  }
 0xbb6   :  { %v1270_v31 = vpop.f32.mrb[7].mxu1  ;;  %1587 = vmatprep.subr.bf16.mxu0 %v3771_v62  ;;  %1941 = vmatprep.subr.bf16.mxu1 %v3771_v62 }
 0xbb7   :  { %3264 = vtanh.f32 %v1268_v26 }
 0xbb8   :  { %3266 = vtanh.f32 %v1266_v35 }
 0xbba   :  { %v3263_v32 = vpop.eup %3262 }
 0xbbb   :  { %1370 = vrot.lane.b32.xlu1 %v3263_v32, %s3385_s2  ;;  %v1366_v36 = vmul.f32 0.5, %v3263_v32 }
 0xbbd   :  { %v3755_v28 = vadd.f32 0.5, %v1366_v36 }
 0xbbf   :  { %v1368_v20 = vmul.f32 %v3755_v28, %v1024_v24  ;;  %v3776_v24 = vld [vmem:[#allocation4 + $0x50] ss:$8 sps:$4 sm:$0xff]  }
 0xbc0   :  { %1588 = vmatpush1.bf16.msra.mxu0 %v3776_v24  ;;  %1942 = vmatpush1.bf16.msra.mxu1 %v3776_v24 }
 0xbc1   :  { %v3750_v34 = vpop.eup %3264  ;;  %1589 = vmatprep.subr.bf16.mxu0 %v3507_v54 }
 0xbc2   :  { %1280 = vrot.lane.b32.xlu0 %v3750_v34, %s3387_s22  ;;  %v3267_v37 = vpop.eup %3266 }
 0xbc3   :  { %v1274_v41 = vmul.f32 0.5, %v3267_v37 }
 0xbc4   :  { %1590 = vmatpush1.bf16.msra.mxu0 %v3509_v55 }
 0xbc5   :  { %v1276_v16 = vadd.f32 0.5, %v1274_v41  ;;  %1591 = vmatprep.subr.bf16.mxu0 %v3511_v56  ;;  %v1275_v56 = vmul.f32 0.5, %v3750_v34  ;;  %v3853_v41 = vld [vmem:[#allocation4 + $0x64] ss:$8 sps:$4 sm:$0xff]  }
 0xbc6   :  { %1943 = vmatprep.subr.bf16.mxu1 %v3853_v41 }
 0xbc7   :  { %v1278_v50 = vmul.f32 %v1276_v16, %v934_v33 }
 0xbc8   :  { %1592 = vmatpush1.bf16.msra.mxu0 %v3515_v57 }
 0xbc9   :  { %1593 = vmatprep.subr.bf16.mxu0 %v3518_v58  ;;  %v1277_v58 = vadd.f32 0.5, %v1275_v56  ;;  %v3886_v56 = vld [vmem:[#allocation4 + $0xb0] ss:$8 sps:$4 sm:$0xff]  }
 0xbcc   :  { %1594 = vmatpush1.bf16.msra.mxu0 %v3521_v59 }
 0xbcd   :  { %1595 = vmatprep.subr.bf16.mxu0 %v3524_v61 }
 0xbd0   :  { %1596 = vmatpush1.bf16.msra.mxu0 %v3528_v63 }
 0xbd1   :  { %1597 = vmatprep.subr.bf16.mxu0 %v3531_v1 }
 0xbd4   :  { %1598 = vmatpush1.bf16.msra.mxu0 %v3535_v2  ;;  %v3180_v2 = vld [vmem:[#allocation4 + $0x20] ss:$8 sps:$4 sm:$0xff]  }
 0xbd5   :  { %1599 = vmatprep.subr.bf16.mxu0 %v3538_v3 }
 0xbd8   :  { %1600 = vmatpush1.bf16.msra.mxu0 %v3541_v4  ;;  %v3181_v4 = vld [vmem:[#allocation4 + $0x30] ss:$8 sps:$4 sm:$0xff]  }
 0xbd9   :  { %1601 = vmatprep.subr.bf16.mxu0 %v3544_v5 }
 0xbdc   :  { %1602 = vmatpush1.bf16.msra.mxu0 %v3547_v6 }
 0xbdd   :  { %1603 = vmatprep.subr.bf16.mxu0 %v3550_v8 }
 0xbe0   :  { %1604 = vmatpush1.bf16.msra.mxu0 %v3553_v9 }
 0xbe1   :  { %1605 = vmatprep.subr.bf16.mxu0 %v3556_v10 }
 0xbe4   :  { %1606 = vmatpush1.bf16.msra.mxu0 %v3559_v11 }
 0xbe5   :  { %1607 = vmatprep.subr.bf16.mxu0 %v3562_v12 }
 0xbe8   :  { %1608 = vmatpush1.bf16.msra.mxu0 %v3565_v13 }
 0xbe9   :  { %1609 = vmatprep.subr.bf16.mxu0 %v3568_v14 }
 0xbec   :  { %1610 = vmatpush1.bf16.msra.mxu0 %v3571_v15 }
 0xbed   :  { %1611 = vmatprep.subr.bf16.mxu0 %v3574_v19 }
 0xbf0   :  { %1612 = vmatpush1.bf16.msra.mxu0 %v3577_v21 }
 0xbf1   :  { %1613 = vmatprep.subr.bf16.mxu0 %v3580_v22 }
 0xbf4   :  { %1614 = vmatpush1.bf16.msra.mxu0 %v3583_v23 }
 0xbf5   :  { %1615 = vmatprep.subr.bf16.mxu0 %v3593_v27 }
 0xbf8   :  { %1616 = vmatpush1.bf16.msra.mxu0 %v3595_v29 }
 0xbf9   :  { %3082 = vmatprep.subr.bf16.mxu0 %v3383_v0 }
 0xc2d   :  { %v1371_v38 = vpop.permute.xlu1 %1370 }
 0xc2e   :  { %v1373_v17 = vmul.f32 %v1371_v38, %v3755_v28 }
 0xc30   :  { %1375 = vrot.lane.b32.xlu1 %v1373_v17, %s3385_s2  ;;  %v3851_v17 = vld [vmem:[#allocation4 + $0x60] ss:$8 sps:$4 sm:$0xff]  }
 0xc31   :  { %1944 = vmatpush1.bf16.msra.mxu1 %v3851_v17 }
 0xc34   :  { %v1281_v42 = vpop.permute.xlu0 %1280 }
 0xc35   :  { %v1283_v18 = vmul.f32 %v1281_v42, %v1276_v16  ;;  %v3855_v16 = vld [vmem:[#allocation4 + $0x74] ss:$8 sps:$4 sm:$0xff]   ;;  %v3859_v42 = vld [vmem:[#allocation4 + $0x70] ss:$8 sps:$4 sm:$0xff]  }
 0xc36   :  { %1945 = vmatprep.subr.bf16.mxu1 %v3855_v16 }
 0xc37   :  { %1285 = vrot.lane.b32.xlu0 %v1283_v18, %s3387_s22  ;;  %1946 = vmatpush1.bf16.msra.mxu1 %v3859_v42 }
 0xca2   :  { %v1376_v45 = vpop.permute.xlu1 %1375 }
 0xca3   :  { %v3761_v46 = vadd.f32 %v1376_v45, %v1368_v20  ;;  %v3862_v20 = vld [vmem:[#allocation4 + $0x84] ss:$8 sps:$4 sm:$0xff]   ;;  %v3212_v45 = vld [vmem:[#allocation4 + $0x20] ss:$8 sps:$4 sm:$0xff]  }
 0xca4   :  { %1947 = vmatprep.subr.bf16.mxu1 %v3862_v20 }
 0xca5   :  { %3268 = vtanh.f32 %v3761_v46 }
 0xca9   :  { %v1286_v48 = vpop.permute.xlu0 %1285 }
 0xcaa   :  { %v3764_v49 = vadd.f32 %v1286_v48, %v1278_v50  ;;  %v3869_v50 = vld [vmem:[#allocation4 + $0x94] ss:$8 sps:$4 sm:$0xff]   ;;  %v3216_v48 = vld [vmem:[#allocation4 + $0x30] ss:$8 sps:$4 sm:$0xff]  }
 0xcac   :  { %3270 = vtanh.f32 %v3764_v49 }
 0xcaf   :  { %v3269_v60 = vpop.eup %3268 }
 0xcb0   :  { %1381 = vrot.lane.b32.xlu1 %v3269_v60, %s3385_s2  ;;  %v3873_v60 = vld [vmem:[#allocation4 + $0x90] ss:$8 sps:$4 sm:$0xff]  }
 0xcb6   :  { %v3271_v33 = vpop.eup %3270 }
 0xcb7   :  { %1291 = vrot.lane.b32.xlu0 %v3271_v33, %s3387_s22  ;;  %v3876_v33 = vld [vmem:[#allocation4 + $0xa4] ss:$8 sps:$4 sm:$0xff]  }
 0xd22   :  { %v1382_v54 = vpop.permute.xlu1 %1381 }
 0xd23   :  { %v1384_v55 = vmul.f32 %v1382_v54, %v3755_v28  ;;  %v3880_v54 = vld [vmem:[#allocation4 + $0xa0] ss:$8 sps:$4 sm:$0xff]  }
 0xd25   :  { %v1655_v57 = vpack.c.bf16 %v1384_v55, %v1384_v55  ;;  %1386 = vrot.lane.b32.xlu1 %v1384_v55, %s3387_s22  ;;  %v3883_v55 = vld [vmem:[#allocation4 + $0xb4] ss:$8 sps:$4 sm:$0xff]  }
 0xd27   :  { %1661 = vrot.lane.b32.xlu0 %v1655_v57, %s3387_s22  ;;  %v3889_v57 = vld [vmem:[#allocation4 + $0xc4] ss:$8 sps:$4 sm:$0xff]  }
 0xd29   :  { %v1292_v59 = vpop.permute.xlu0 %1291 }
 0xd2a   :  { %v3818_v61 = vmul.f32 %v1292_v59, %v1277_v58  ;;  %v3892_v58 = vld [vmem:[#allocation4 + $0xc0] ss:$8 sps:$4 sm:$0xff]   ;;  %v3895_v59 = vld [vmem:[#allocation4 + $0xd4] ss:$8 sps:$4 sm:$0xff]  }
 0xd2c   :  { %v2890_v63 = vpack.c.bf16 %v3818_v61, %v3818_v61 }
 0xd2e   :  { %2891 = vmatprep.mubr.msk.bf16.mxu0 %vm3609_vm3, %v2890_v63  ;;  %v3898_v63 = vld [vmem:[#allocation4 + $0xd0] ss:$8 sps:$4 sm:$0xff]  }
 0xd97   :  { %v1387_v1 = vpop.permute.xlu1 %1386 }
 0xd98   :  { %v2893_v3 = vpack.c.bf16 %v1387_v1, %v1387_v1  ;;  %v3901_v1 = vld [vmem:[#allocation4 + $0xe4] ss:$8 sps:$4 sm:$0xff]  }
 0xd99   :  { %v1662_v5 = vpop.permute.xlu0 %1661 }
 0xd9a   :  { %2894 = vmatmul.mubr.msk.bf16.vlgmr.msra.gmra.mrb[28].mxu0 %vm3622_vm4, %v2893_v3  ;;  %v3907_v3 = vld [vmem:[#allocation4 + $0xf4] ss:$8 sps:$4 sm:$0xff]  }
 0xd9b   :  { %3083 = vmatpush3.bf16.msra.mxu0 %v3180_v2  ;;  %3086 = vmatprep.mubr.msk.bf16.mxu0 %vm3384_vm0, %v3383_v0  ;;  %v3904_v2 = vld [vmem:[#allocation4 + $0xe0] ss:$8 sps:$4 sm:$0xff]  }
 0xd9c   :  { %3084 = vmatprep.subr.bf16.mxu0 %v3383_v0 }
 0xd9f   :  { %3085 = vmatpush3.bf16.msra.mxu0 %v3181_v4  ;;  %v3910_v4 = vld [vmem:[#allocation4 + $0xf0] ss:$8 sps:$4 sm:$0xff]  }
 0xda0   :  { %3090 = vmatprep.subr.bf16.mxu0 %v3383_v0 }
 0xda2   :  { %3087 = vmatmul.mubr.msk.bf16.vlgmr.msra.gmra.mrb[32].mxu0 %vm75_vm1, %v1662_v5  ;;  %v3913_v5 = vld [vmem:[#allocation4 + $0x104] ss:$8 sps:$4 sm:$0xff]  }
 0xda3   :  { %3094 = vmatprep.mubr.msk.bf16.mxu0 %vm3384_vm0, %v3383_v0  ;;  %3091 = vmatpush3.bf16.msra.mxu0 %v3212_v45 }
 0xda4   :  { %3092 = vmatprep.subr.bf16.mxu0 %v3383_v0 }
 0xda7   :  { %3093 = vmatpush3.bf16.msra.mxu0 %v3216_v48 }
 0xda8   :  { %2293 = vmatprep.subr.bf16.mxu0 %v3769_v52 }
 0xe6d   :  { %v1619_v6 = vpop.f32.mrb[28].mxu0 }
 0xe6e   :  { %v1621_v8 = vpop.f32.mrb[29].mxu0  ;;  %v1620_v30 = vadd.f32 %v1619_v6, %v3589_v25  ;;  %v3916_v6 = vld [vmem:[#allocation4 + $0x100] ss:$8 sps:$4 sm:$0xff]  }
 0xe6f   :  { %v1623_v9 = vpop.f32.mrb[30].mxu0  ;;  %v1622_v21 = vadd.f32 %v1621_v8, %v3495_v47  ;;  %v3919_v8 = vld [vmem:[#allocation4 + $0x114] ss:$8 sps:$4 sm:$0xff]  }
 0xe70   :  { %v1624_v10 = vpop.f32.mrb[31].mxu0  ;;  %v3922_v9 = vld [vmem:[#allocation4 + $0x110] ss:$8 sps:$4 sm:$0xff]  }
 0xe71   :  { %v3926_v10 = vld [vmem:[#allocation4 + $0x124] ss:$8 sps:$4 sm:$0xff]  }
 0xe75   :  { %v1712_v11 = vpop.f32.mrb[32].mxu0 }
 0xe76   :  { %v1718_v12 = vadd.f32 %v1712_v11, %v3449_v7  ;;  %v3088_v13 = vpop.f32.mrb[33].mxu0 }
 0xe77   :  { %v1715_v14 = vpop.f32.mrb[34].mxu0 }
 0xe78   :  { %3272 = vtanh.f32 %v1718_v12  ;;  %v3089_v15 = vpop.f32.mrb[35].mxu0  ;;  %v3929_v12 = vld [vmem:[#allocation4 + $0x120] ss:$8 sps:$4 sm:$0xff]  }
 0xe79   :  { %3274 = vtanh.f32 %v1622_v21  ;;  %v3935_v15 = vld [vmem:[#allocation4 + $0x134] ss:$8 sps:$4 sm:$0xff]  }
 0xe7a   :  { %3276 = vtanh.f32 %v1620_v30 }
 0xe82   :  { %v3273_v19 = vpop.eup %3272 }
 0xe83   :  { %1724 = vrot.lane.b32.xlu1 %v3273_v19, %s3385_s2  ;;  %v1720_v22 = vmul.f32 0.5, %v3273_v19  ;;  %v3840_v26 = vpop.eup %3274  ;;  %v3937_v19 = vld [vmem:[#allocation4 + $0x130] ss:$8 sps:$4 sm:$0xff]  }
 0xe84   :  { %v3277_v31 = vpop.eup %3276 }
 0xe85   :  { %v3836_v23 = vadd.f32 0.5, %v1720_v22  ;;  %v1628_v34 = vmul.f32 0.5, %v3277_v31 }
 0xe87   :  { %v1722_v32 = vmul.f32 %v3836_v23, %v3761_v46  ;;  %v1630_v37 = vadd.f32 0.5, %v1628_v34  ;;  %v3866_v46 = vld [vmem:[#allocation4 + $0x80] ss:$8 sps:$4 sm:$0xff]  }
 0xe88   :  { %1948 = vmatpush1.bf16.msra.mxu1 %v3866_v46 }
 0xe89   :  { %1949 = vmatprep.subr.bf16.mxu1 %v3869_v50  ;;  %v1632_v11 = vmul.f32 %v1630_v37, %v3764_v49 }
 0xe8c   :  { %1950 = vmatpush1.bf16.msra.mxu1 %v3873_v60 }
 0xe8d   :  { %1951 = vmatprep.subr.bf16.mxu1 %v3876_v33 }
 0xe90   :  { %1952 = vmatpush1.bf16.msra.mxu1 %v3880_v54 }
 0xe91   :  { %1953 = vmatprep.subr.bf16.mxu1 %v3883_v55 }
 0xe94   :  { %1954 = vmatpush1.bf16.msra.mxu1 %v3886_v56 }
 0xe95   :  { %1955 = vmatprep.subr.bf16.mxu1 %v3889_v57 }
 0xe98   :  { %1956 = vmatpush1.bf16.msra.mxu1 %v3892_v58 }
 0xe99   :  { %1957 = vmatprep.subr.bf16.mxu1 %v3895_v59 }
 0xe9c   :  { %1958 = vmatpush1.bf16.msra.mxu1 %v3898_v63 }
 0xe9d   :  { %1959 = vmatprep.subr.bf16.mxu1 %v3901_v1 }
 0xea0   :  { %1960 = vmatpush1.bf16.msra.mxu1 %v3904_v2 }
 0xea1   :  { %1961 = vmatprep.subr.bf16.mxu1 %v3907_v3 }
 0xea4   :  { %1962 = vmatpush1.bf16.msra.mxu1 %v3910_v4 }
 0xea5   :  { %1963 = vmatprep.subr.bf16.mxu1 %v3913_v5 }
 0xea8   :  { %1964 = vmatpush1.bf16.msra.mxu1 %v3916_v6 }
 0xea9   :  { %1965 = vmatprep.subr.bf16.mxu1 %v3919_v8 }
 0xeac   :  { %1966 = vmatpush1.bf16.msra.mxu1 %v3922_v9 }
 0xead   :  { %1967 = vmatprep.subr.bf16.mxu1 %v3926_v10 }
 0xeb0   :  { %1968 = vmatpush1.bf16.msra.mxu1 %v3929_v12 }
 0xeb1   :  { %1969 = vmatprep.subr.bf16.mxu1 %v3935_v15 }
 0xeb4   :  { %1970 = vmatpush1.bf16.msra.mxu1 %v3937_v19 }
 0xeb5   :  { %3098 = vmatprep.subr.bf16.mxu1 %v3383_v0 }
 0xef5   :  { %v1725_v27 = vpop.permute.xlu1 %1724 }
 0xef6   :  { %v1727_v29 = vmul.f32 %v1725_v27, %v3836_v23 }
 0xef8   :  { %1729 = vrot.lane.b32.xlu0 %v1727_v29, %s3385_s2  ;;  %v1629_v29 = vmul.f32 0.5, %v3840_v26 }
 0xefa   :  { %v1631_v31 = vadd.f32 0.5, %v1629_v29 }
 0xefc   :  { %1634 = vrot.lane.b32.xlu0 %v3840_v26, %s3387_s22 }
 0xf6a   :  { %v1730_v35 = vpop.permute.xlu0 %1729 }
 0xf6b   :  { %v3847_v36 = vadd.f32 %v1730_v35, %v1722_v32 }
 0xf6d   :  { %3278 = vtanh.f32 %v3847_v36 }
 0xf6e   :  { %v1635_v28 = vpop.permute.xlu0 %1634 }
 0xf6f   :  { %v1637_v38 = vmul.f32 %v1635_v28, %v1630_v37 }
 0xf71   :  { %1639 = vrot.lane.b32.xlu0 %v1637_v38, %s3387_s22 }
 0xf77   :  { %v3279_v18 = vpop.eup %3278 }
 0xf78   :  { %1735 = vrot.lane.b32.xlu1 %v3279_v18, %s3385_s2 }
 0xfe3   :  { %v1640_v13 = vpop.permute.xlu0 %1639 }
 0xfe4   :  { %v3932_v14 = vadd.f32 %v1640_v13, %v1632_v11 }
 0xfe6   :  { %3280 = vtanh.f32 %v3932_v14 }
 0xfea   :  { %v1736_v49 = vpop.permute.xlu1 %1735 }
 0xfeb   :  { %v1738_v21 = vmul.f32 %v1736_v49, %v3836_v23 }
 0xfed   :  { %v2009_v22 = vpack.c.bf16 %v1738_v21, %v1738_v21  ;;  %1740 = vrot.lane.b32.xlu0 %v1738_v21, %s3387_s22 }
 0xfef   :  { %2015 = vrot.lane.b32.xlu1 %v2009_v22, %s3387_s22 }
 0xff0   :  { %v3281_v27 = vpop.eup %3280 }
 0xff3   :  { %1645 = vrot.lane.b32.xlu1 %v3281_v27, %s3387_s22 }
0x105f   :  { %v1741_v23 = vpop.permute.xlu0 %1740 }
0x1060   :  { %v2934_v26 = vpack.c.bf16 %v1741_v23, %v1741_v23 }
0x1061   :  { %v2016_v30 = vpop.permute.xlu1 %2015 }
0x1062   :  { %3095 = vmatmul.mubr.msk.bf16.vlgmr.msra.gmra.mrb[36].mxu0 %vm75_vm1, %v2016_v30 }
0x1063   :  { %2294 = vmatpush1.bf16.msra.mxu0 %v3767_v51 }
0x1064   :  { %2295 = vmatprep.subr.bf16.mxu0 %v3771_v62 }
0x1065   :  { %v1646_v32 = vpop.permute.xlu1 %1645 }
0x1066   :  { %v3951_v34 = vmul.f32 %v1646_v32, %v1631_v31 }
0x1067   :  { %2296 = vmatpush1.bf16.msra.mxu0 %v3776_v24 }
0x1068   :  { %v2931_v35 = vpack.c.bf16 %v3951_v34, %v3951_v34  ;;  %2297 = vmatprep.subr.bf16.mxu0 %v3853_v41 }
0x106a   :  { %2932 = vmatprep.mubr.msk.bf16.mxu1 %vm3609_vm3, %v2931_v35 }
0x106b   :  { %2935 = vmatmul.mubr.msk.bf16.vlgmr.msra.gmra.mrb[8].mxu1 %vm3622_vm4, %v2934_v26  ;;  %2298 = vmatpush1.bf16.msra.mxu0 %v3851_v17 }
0x106c   :  { %2299 = vmatprep.subr.bf16.mxu0 %v3855_v16  ;;  %3102 = vmatprep.mubr.msk.bf16.mxu1 %vm3384_vm0, %v3383_v0 }
0x106f   :  { %2300 = vmatpush1.bf16.msra.mxu0 %v3859_v42 }
0x1070   :  { %2301 = vmatprep.subr.bf16.mxu0 %v3862_v20 }
0x1073   :  { %2302 = vmatpush1.bf16.msra.mxu0 %v3866_v46 }
0x1074   :  { %2303 = vmatprep.subr.bf16.mxu0 %v3869_v50 }
0x1077   :  { %2304 = vmatpush1.bf16.msra.mxu0 %v3873_v60 }
0x1078   :  { %2305 = vmatprep.subr.bf16.mxu0 %v3876_v33 }
0x107b   :  { %2306 = vmatpush1.bf16.msra.mxu0 %v3880_v54 }
0x107c   :  { %2307 = vmatprep.subr.bf16.mxu0 %v3883_v55 }
0x107f   :  { %2308 = vmatpush1.bf16.msra.mxu0 %v3886_v56 }
0x1080   :  { %2309 = vmatprep.subr.bf16.mxu0 %v3889_v57 }
0x1083   :  { %2310 = vmatpush1.bf16.msra.mxu0 %v3892_v58 }
0x1084   :  { %2311 = vmatprep.subr.bf16.mxu0 %v3895_v59 }
0x1087   :  { %2312 = vmatpush1.bf16.msra.mxu0 %v3898_v63 }
0x1088   :  { %2313 = vmatprep.subr.bf16.mxu0 %v3901_v1 }
0x108b   :  { %2314 = vmatpush1.bf16.msra.mxu0 %v3904_v2 }
0x108c   :  { %2315 = vmatprep.subr.bf16.mxu0 %v3907_v3 }
0x108f   :  { %2316 = vmatpush1.bf16.msra.mxu0 %v3910_v4 }
0x1090   :  { %2317 = vmatprep.subr.bf16.mxu0 %v3913_v5 }
0x1093   :  { %2318 = vmatpush1.bf16.msra.mxu0 %v3916_v6 }
0x1094   :  { %2319 = vmatprep.subr.bf16.mxu0 %v3919_v8 }
0x1097   :  { %2320 = vmatpush1.bf16.msra.mxu0 %v3922_v9 }
0x1098   :  { %2321 = vmatprep.subr.bf16.mxu0 %v3926_v10 }
0x109b   :  { %2322 = vmatpush1.bf16.msra.mxu0 %v3929_v12 }
0x109c   :  { %2323 = vmatprep.subr.bf16.mxu0 %v3935_v15 }
0x109f   :  { %2324 = vmatpush1.bf16.msra.mxu0 %v3937_v19 }
0x1135   :  { %v2066_v37 = vpop.f32.mrb[36].mxu0 }
0x1136   :  { %v2072_v28 = vadd.f32 %v2066_v37, %v3449_v7  ;;  %v3096_v38 = vpop.f32.mrb[37].mxu0 }
0x1137   :  { %v2069_v18 = vpop.f32.mrb[38].mxu0 }
0x1138   :  { %3282 = vtanh.f32 %v2072_v28  ;;  %v3097_v45 = vpop.f32.mrb[39].mxu0 }
0x113e   :  { %v1973_v48 = vpop.f32.mrb[8].mxu1 }
0x113f   :  { %v1975_v11 = vpop.f32.mrb[9].mxu1  ;;  %v1974_v29 = vadd.f32 %v1973_v48, %v3589_v25 }
0x1140   :  { %v1976_v13 = vadd.f32 %v1975_v11, %v3495_v47  ;;  %v1977_v49 = vpop.f32.mrb[10].mxu1 }
0x1141   :  { %v1978_v21 = vpop.f32.mrb[11].mxu1 }
0x1142   :  { %v3283_v22 = vpop.eup %3282  ;;  %3284 = vtanh.f32 %v1976_v13 }
0x1143   :  { %2078 = vrot.lane.b32.xlu1 %v3283_v22, %s3385_s2  ;;  %3286 = vtanh.f32 %v1974_v29  ;;  %v2074_v30 = vmul.f32 0.5, %v3283_v22  ;;  %v3226_v22 = vld [vmem:[#allocation4 + $0x20] ss:$8 sps:$4 sm:$0xff]   ;;  %v3227_v29 = vld [vmem:[#allocation4 + $0x30] ss:$8 sps:$4 sm:$0xff]  }
0x1144   :  { %3099 = vmatpush3.bf16.msra.mxu1 %v3226_v22 }
0x1145   :  { %v2075_v31 = vadd.f32 0.5, %v2074_v30  ;;  %3100 = vmatprep.subr.bf16.mxu1 %v3383_v0 }
0x1147   :  { %v2076_v18 = vmul.f32 %v2075_v31, %v3847_v36 }
0x1148   :  { %3101 = vmatpush3.bf16.msra.mxu1 %v3227_v29 }
0x1149   :  { %2647 = vmatprep.subr.bf16.mxu1 %v3769_v52 }
0x114c   :  { %v3285_v27 = vpop.eup %3284 }
0x114d   :  { %1988 = vrot.lane.b32.xlu1 %v3285_v27, %s3387_s22  ;;  %v3287_v35 = vpop.eup %3286 }
0x114e   :  { %v1982_v26 = vmul.f32 0.5, %v3287_v35 }
0x1150   :  { %v1984_v37 = vadd.f32 0.5, %v1982_v26 }
0x1152   :  { %v1986_v48 = vmul.f32 %v1984_v37, %v3932_v14 }
0x11b5   :  { %v2079_v32 = vpop.permute.xlu1 %2078 }
0x11b6   :  { %v2081_v23 = vmul.f32 %v2079_v32, %v2075_v31 }
0x11b8   :  { %2083 = vrot.lane.b32.xlu0 %v2081_v23, %s3385_s2  ;;  %v1983_v23 = vmul.f32 0.5, %v3285_v27 }
0x11ba   :  { %v1985_v35 = vadd.f32 0.5, %v1983_v23 }
0x11bf   :  { %v1989_v28 = vpop.permute.xlu1 %1988 }
0x11c0   :  { %v1991_v38 = vmul.f32 %v1989_v28, %v1984_v37 }
0x11c2   :  { %1993 = vrot.lane.b32.xlu1 %v1991_v38, %s3387_s22 }
0x122a   :  { %v2084_v45 = vpop.permute.xlu0 %2083 }
0x122b   :  { %v3998_v11 = vadd.f32 %v2084_v45, %v2076_v18 }
0x122d   :  { %3288 = vtanh.f32 %v3998_v11 }
0x1234   :  { %v1994_v13 = vpop.permute.xlu1 %1993 }
0x1235   :  { %v4002_v49 = vadd.f32 %v1994_v13, %v1986_v48 }
0x1237   :  { %v3289_v21 = vpop.eup %3288  ;;  %3290 = vtanh.f32 %v4002_v49 }
0x1238   :  { %2089 = vrot.lane.b32.xlu0 %v3289_v21, %s3385_s2 }
0x1241   :  { %v3291_v36 = vpop.eup %3290 }
0x1242   :  { %1999 = vrot.lane.b32.xlu1 %v3291_v36, %s3387_s22 }
0x12aa   :  { %v2090_v14 = vpop.permute.xlu0 %2089 }
0x12ab   :  { %v2092_v30 = vmul.f32 %v2090_v14, %v2075_v31 }
0x12ad   :  { %v2363_v32 = vpack.c.bf16 %v2092_v30, %v2092_v30 }
0x12af   :  { %2369 = vrot.lane.b32.xlu0 %v2363_v32, %s3387_s22 }
0x12b3   :  { %2094 = vrot.lane.b32.xlu0 %v2092_v30, %s3387_s22  ;;  %v4072_v30 = vld [vmem:[#allocation6 + $0x2] sm:$0x1] }
0x12b4   :  { %v2000_v26 = vpop.permute.xlu1 %1999  ;;  %v229_v39 = vmul.f32 %v3607_v40, %v4072_v30  ;;  %v941_v44 = vmul.f32 %v3736_v43, %v4072_v30  ;;  %v1295_v23 = vmul.f32 %v3818_v61, %v4072_v30  ;;  %v587_v61 = vmul.f32 %v3709_v53, %v4072_v30 }
0x12b5   :  { %v4011_v37 = vmul.f32 %v2000_v26, %v1985_v35 }
0x12b6   :  { %v231_v32 = vsel %vm230_vm5, %v229_v39, 0.0  ;;  %v1296_v35 = vsel %vm230_vm5, %v1295_v23, 0.0 }
0x12b7   :  { %v2972_v0 = vpack.c.bf16 %v4011_v37, %v4011_v37  ;;  %v2003_v26 = vmul.f32 %v4011_v37, %v4072_v30  ;;  %v1649_v37 = vmul.f32 %v3951_v34, %v4072_v30 }
0x12b9   :  { %2973 = vmatprep.mubr.msk.bf16.mxu0 %vm3609_vm3, %v2972_v0  ;;  %v2004_v40 = vsel %vm230_vm5, %v2003_v26, 0.0 }
0x1321   :  { %v2370_v52 = vpop.permute.xlu0 %2369 }
0x1322   :  { %3103 = vmatmul.mubr.msk.bf16.vlgmr.msra.gmra.mrb[12].mxu1 %vm75_vm1, %v2370_v52 }
0x1323   :  { %2648 = vmatpush1.bf16.msra.mxu1 %v3767_v51 }
0x1324   :  { %2649 = vmatprep.subr.bf16.mxu1 %v3771_v62 }
0x1325   :  { %v2095_v27 = vpop.permute.xlu0 %2094 }
0x1326   :  { %v2975_v31 = vpack.c.bf16 %v2095_v27, %v2095_v27 }
0x1327   :  { %2650 = vmatpush1.bf16.msra.mxu1 %v3776_v24 }
0x1328   :  { %2976 = vmatmul.mubr.msk.bf16.vlgmr.msra.gmra.mrb[40].mxu0 %vm3622_vm4, %v2975_v31  ;;  %2651 = vmatprep.subr.bf16.mxu1 %v3853_v41 }
0x132b   :  { %2652 = vmatpush1.bf16.msra.mxu1 %v3851_v17 }
0x132c   :  { %2653 = vmatprep.subr.bf16.mxu1 %v3855_v16 }
0x132f   :  { %2654 = vmatpush1.bf16.msra.mxu1 %v3859_v42 }
0x1330   :  { %2655 = vmatprep.subr.bf16.mxu1 %v3862_v20 }
0x1333   :  { %2656 = vmatpush1.bf16.msra.mxu1 %v3866_v46 }
0x1334   :  { %2657 = vmatprep.subr.bf16.mxu1 %v3869_v50 }
0x1337   :  { %2658 = vmatpush1.bf16.msra.mxu1 %v3873_v60 }
0x1338   :  { %2659 = vmatprep.subr.bf16.mxu1 %v3876_v33 }
0x133b   :  { %2660 = vmatpush1.bf16.msra.mxu1 %v3880_v54 }
0x133c   :  { %2661 = vmatprep.subr.bf16.mxu1 %v3883_v55 }
0x133f   :  { %2662 = vmatpush1.bf16.msra.mxu1 %v3886_v56 }
0x1340   :  { %2663 = vmatprep.subr.bf16.mxu1 %v3889_v57 }
0x1343   :  { %2664 = vmatpush1.bf16.msra.mxu1 %v3892_v58 }
0x1344   :  { %2665 = vmatprep.subr.bf16.mxu1 %v3895_v59 }
0x1347   :  { %2666 = vmatpush1.bf16.msra.mxu1 %v3898_v63 }
0x1348   :  { %2667 = vmatprep.subr.bf16.mxu1 %v3901_v1 }
0x134b   :  { %2668 = vmatpush1.bf16.msra.mxu1 %v3904_v2 }
0x134c   :  { %2669 = vmatprep.subr.bf16.mxu1 %v3907_v3 }
0x134f   :  { %2670 = vmatpush1.bf16.msra.mxu1 %v3910_v4 }
0x1350   :  { %2671 = vmatprep.subr.bf16.mxu1 %v3913_v5 }
0x1353   :  { %2672 = vmatpush1.bf16.msra.mxu1 %v3916_v6 }
0x1354   :  { %2673 = vmatprep.subr.bf16.mxu1 %v3919_v8 }
0x1357   :  { %2674 = vmatpush1.bf16.msra.mxu1 %v3922_v9 }
0x1358   :  { %2675 = vmatprep.subr.bf16.mxu1 %v3926_v10 }
0x135b   :  { %2676 = vmatpush1.bf16.msra.mxu1 %v3929_v12 }
0x135c   :  { %2677 = vmatprep.subr.bf16.mxu1 %v3935_v15 }
0x135f   :  { %2678 = vmatpush1.bf16.msra.mxu1 %v3937_v19 }
0x13f5   :  { %v2420_v51 = vpop.f32.mrb[12].mxu1 }
0x13f6   :  { %v2426_v62 = vadd.f32 %v2420_v51, %v3449_v7  ;;  %v3104_v24 = vpop.f32.mrb[13].mxu1 }
0x13f7   :  { %v2423_v17 = vpop.f32.mrb[14].mxu1  ;;  %v1650_v24 = vsel %vm230_vm5, %v1649_v37, 0.0 }
0x13f8   :  { %3292 = vtanh.f32 %v2426_v62  ;;  %v3105_v41 = vpop.f32.mrb[15].mxu1  ;;  %v588_v62 = vsel %vm230_vm5, %v587_v61, 0.0 }
0x13f9   :  { %v56_v41 = vld [vmem:[#allocation6 + $0x3] sm:$0x1] }
0x13fb   :  { %v2327_v16 = vpop.f32.mrb[40].mxu0 }
0x13fc   :  { %v2329_v42 = vpop.f32.mrb[41].mxu0  ;;  %v2328_v54 = vadd.f32 %v2327_v16, %v3589_v25 }
0x13fd   :  { %v2330_v20 = vadd.f32 %v2329_v42, %v3495_v47  ;;  %v2331_v46 = vpop.f32.mrb[42].mxu0 }
0x13fe   :  { %v2332_v50 = vpop.f32.mrb[43].mxu0 }
0x13ff   :  { %3294 = vtanh.f32 %v2330_v20 }
0x1400   :  { %3296 = vtanh.f32 %v2328_v54 }
0x1402   :  { %v3293_v60 = vpop.eup %3292 }
0x1403   :  { %2432 = vrot.lane.b32.xlu1 %v3293_v60, %s3385_s2  ;;  %v2428_v7 = vmul.f32 0.5, %v3293_v60 }
0x1405   :  { %v2429_v56 = vadd.f32 0.5, %v2428_v7 }
0x1407   :  { %v2430_v3 = vmul.f32 %v2429_v56, %v3998_v11 }
0x1409   :  { %v3295_v33 = vpop.eup %3294 }
0x140a   :  { %2342 = vrot.lane.b32.xlu0 %v3295_v33, %s3387_s22  ;;  %v3297_v55 = vpop.eup %3296  ;;  %v2337_v28 = vmul.f32 0.5, %v3295_v33 }
0x140b   :  { %v2336_v59 = vmul.f32 0.5, %v3297_v55 }
0x140c   :  { %v2339_v38 = vadd.f32 0.5, %v2337_v28 }
0x140d   :  { %v2338_v63 = vadd.f32 0.5, %v2336_v59 }
0x140f   :  { %v2340_v6 = vmul.f32 %v2338_v63, %v4002_v49 }
0x1475   :  { %v2433_v57 = vpop.permute.xlu1 %2432 }
0x1476   :  { %v2435_v58 = vmul.f32 %v2433_v57, %v2429_v56 }
0x1478   :  { %2437 = vrot.lane.b32.xlu1 %v2435_v58, %s3385_s2 }
0x147c   :  { %v2343_v1 = vpop.permute.xlu0 %2342 }
0x147d   :  { %v2345_v2 = vmul.f32 %v2343_v1, %v2338_v63 }
0x147f   :  { %2347 = vrot.lane.b32.xlu0 %v2345_v2, %s3387_s22 }
0x14ea   :  { %v2438_v4 = vpop.permute.xlu1 %2437 }
0x14eb   :  { %v2440_v5 = vadd.f32 %v2438_v4, %v2430_v3 }
0x14ed   :  { %3298 = vtanh.f32 %v2440_v5 }
0x14f1   :  { %v2348_v8 = vpop.permute.xlu0 %2347 }
0x14f2   :  { %v4060_v9 = vadd.f32 %v2348_v8, %v2340_v6 }
0x14f4   :  { %3300 = vtanh.f32 %v4060_v9 }
0x14f7   :  { %v3299_v10 = vpop.eup %3298 }
0x14f8   :  { %2443 = vrot.lane.b32.xlu1 %v3299_v10, %s3385_s2 }
0x14fe   :  { %v3301_v12 = vpop.eup %3300 }
0x14ff   :  { %2353 = vrot.lane.b32.xlu0 %v3301_v12, %s3387_s22 }
0x156a   :  { %v2444_v15 = vpop.permute.xlu1 %2443 }
0x156b   :  { %v2446_v19 = vmul.f32 %v2444_v15, %v2429_v56 }
0x156d   :  { %2448 = vrot.lane.b32.xlu1 %v2446_v19, %s3387_s22 }
0x1571   :  { %v2354_v18 = vpop.permute.xlu0 %2353 }
0x1572   :  { %v2356_v45 = vmul.f32 %v2354_v18, %v2339_v38 }
0x1574   :  { %v3013_v11 = vpack.c.bf16 %v2356_v45, %v2356_v45 }
0x1576   :  { %3014 = vmatprep.mubr.msk.bf16.mxu1 %vm3609_vm3, %v3013_v11 }
0x15df   :  { %v2449_v48 = vpop.permute.xlu1 %2448 }
0x15e0   :  { %v3016_v13 = vpack.c.bf16 %v2449_v48, %v2449_v48 }
0x15e2   :  { %3017 = vmatmul.mubr.msk.bf16.vlgmr.msra.gmra.mrb[16].mxu1 %vm3622_vm4, %v3016_v13 }
0x16b5   :  { %v2681_v49 = vpop.f32.mrb[16].mxu1 }
0x16b6   :  { %v2683_v21 = vpop.f32.mrb[17].mxu1  ;;  %v2682_v0 = vadd.f32 %v2681_v49, %v3589_v25  ;;  %v2357_v25 = vmul.f32 %v2356_v45, %v4072_v30 }
0x16b7   :  { %v2684_v22 = vadd.f32 %v2683_v21, %v3495_v47  ;;  %v2685_v29 = vpop.f32.mrb[18].mxu1  ;;  %v942_v47 = vsel %vm230_vm5, %v941_v44, 0.0 }
0x16b8   :  { %v2686_v36 = vpop.f32.mrb[19].mxu1  ;;  %v2358_v17 = vsel %vm230_vm5, %v2357_v25, 0.0 }
0x16b9   :  { %3302 = vtanh.f32 %v2684_v22 }
0x16ba   :  { %3304 = vtanh.f32 %v2682_v0 }
0x16c3   :  { %v3303_v14 = vpop.eup %3302 }
0x16c4   :  { %2696 = vrot.lane.b32.xlu0 %v3303_v14, %s3387_s22  ;;  %v3305_v43 = vpop.eup %3304  ;;  %v2691_v2 = vmul.f32 0.5, %v3303_v14 }
0x16c5   :  { %v2690_v52 = vmul.f32 0.5, %v3305_v43 }
0x16c6   :  { %v2693_v3 = vadd.f32 0.5, %v2691_v2 }
0x16c7   :  { %v2692_v27 = vadd.f32 0.5, %v2690_v52 }
0x16c9   :  { %v2694_v33 = vmul.f32 %v2692_v27, %v4060_v9 }
0x16e3   :  { %232 = vadd.xlane.f32.xlu0 %v231_v32 }
0x16e7   :  { %943 = vadd.xlane.f32.xlu0 %v942_v47 }
0x16eb   :  { %1297 = vadd.xlane.f32.xlu0 %v1296_v35 }
0x16ef   :  { %2005 = vadd.xlane.f32.xlu0 %v2004_v40 }
0x1736   :  { %v2697_v31 = vpop.permute.xlu0 %2696 }
0x1737   :  { %v2699_v51 = vmul.f32 %v2697_v31, %v2692_v27 }
0x1739   :  { %2701 = vrot.lane.b32.xlu1 %v2699_v51, %s3387_s22 }
0x175d   :  { %589 = vadd.xlane.f32.xlu1 %v588_v62 }
0x1761   :  { %1651 = vadd.xlane.f32.xlu1 %v1650_v24 }
0x1765   :  { %2359 = vadd.xlane.f32.xlu1 %v2358_v17 }
0x1770   :  { %v233_v16 = vpop.xlane.xlu0 %232 }
0x1771   :  { %v234_v42 = vadd.f32 %v233_v16, %v56_v41 }
0x1773   :  { %236 = vst.msk [vmem:[%s4135_s3] sm:$0x1] %vm235_vm6, %v234_v42 }
0x1774   :  { %v944_v53 = vpop.xlane.xlu0 %943 }
0x1775   :  { %v945_v34 = vadd.f32 %v944_v53, %v56_v41 }
0x1777   :  { %946 = vst.msk [vmem:[%s4135_s3 + $0x2] sm:$0x1] %vm235_vm6, %v945_v34 }
0x1778   :  { %v1298_v20 = vpop.xlane.xlu0 %1297 }
0x1779   :  { %v1299_v46 = vadd.f32 %v1298_v20, %v56_v41 }
0x177b   :  { %1300 = vst.msk [vmem:[%s4135_s3 + $0x3] sm:$0x1] %vm235_vm6, %v1299_v46 }
0x177c   :  { %v2006_v50 = vpop.xlane.xlu0 %2005 }
0x177d   :  { %v2007_v60 = vadd.f32 %v2006_v50, %v56_v41 }
0x177f   :  { %2008 = vst.msk [vmem:[%s4135_s3 + $0x5] sm:$0x1] %vm235_vm6, %v2007_v60 }
0x17ab   :  { %v2702_v54 = vpop.permute.xlu1 %2701 }
0x17ac   :  { %v2704_v7 = vadd.f32 %v2702_v54, %v2694_v33 }
0x17ae   :  { %3306 = vtanh.f32 %v2704_v7 }
0x17b8   :  { %v3307_v55 = vpop.eup %3306 }
0x17b9   :  { %2707 = vrot.lane.b32.xlu0 %v3307_v55, %s3387_s22 }
0x17ea   :  { %v590_v56 = vpop.xlane.xlu1 %589 }
0x17eb   :  { %v591_v57 = vadd.f32 %v590_v56, %v56_v41 }
0x17ed   :  { %592 = vst.msk [vmem:[%s4135_s3 + $0x1] sm:$0x1] %vm235_vm6, %v591_v57 }
0x17ee   :  { %v1652_v58 = vpop.xlane.xlu1 %1651 }
0x17ef   :  { %v1653_v59 = vadd.f32 %v1652_v58, %v56_v41 }
0x17f1   :  { %1654 = vst.msk [vmem:[%s4135_s3 + $0x4] sm:$0x1] %vm235_vm6, %v1653_v59 }
0x17f2   :  { %v2360_v63 = vpop.xlane.xlu1 %2359 }
0x17f3   :  { %v2361_v1 = vadd.f32 %v2360_v63, %v56_v41 }
0x17f5   :  { %2362 = vst.msk [vmem:[%s4135_s3 + $0x6] sm:$0x1] %vm235_vm6, %v2361_v1 }
0x182b   :  { %v2708_v4 = vpop.permute.xlu0 %2707 }
0x182c   :  { %v2710_v5 = vmul.f32 %v2708_v4, %v2693_v3 }
0x182e   :  { %v2711_v6 = vmul.f32 %v2710_v5, %v4072_v30 }
0x1830   :  { %v2712_v8 = vsel %vm230_vm5, %v2711_v6, 0.0 }
0x1831   :  { %2713 = vadd.xlane.f32.xlu1 %v2712_v8 }
0x18be   :  { %v2714_v9 = vpop.xlane.xlu1 %2713 }
0x18bf   :  { %v2715_v10 = vadd.f32 %v2714_v9, %v56_v41 }
0x18c1   :  { %2716 = vst.msk [vmem:[%s4135_s3 + $0x7] sm:$0x1] %vm235_vm6, %v2715_v10 }
0x18c2   :  { %2721 = vsyncpa [#allocation3], 1 }
0x18c3   :  { %2722 = vsyncpa [#allocation5], 1 }

</bundles_post_ra>
